<compile_context>
chip_gen: v6e
topology: v6e:2x2x1
jax: 0.10.0
libtpu: 0.0.40
codegen_flags: <defaults>
</compile_context>

<pallas_src>
import functools
import math

import jax
import jax.numpy as jnp
import numpy as np
from jax.experimental import pallas as pl
from jax.experimental.pallas import tpu as pltpu

EPS = 1e-5
SLOPE = 0.2
MAX_TILE = 4096  # max pixel-tile (lanes) for the tiled, norm-free layers


@functools.lru_cache(maxsize=None)
def _vmem_limit_bytes():
    """Generation-aware scoped-VMEM budget (safe fallback off-TPU)."""
    try:
        cap = int(pltpu.get_tpu_info().vmem_capacity_bytes)
    except Exception:  # no TPU / interpret environment
        cap = 64 * 1024 * 1024
    return min(cap * 3 // 4, 96 * 1024 * 1024)


def _compiler_params(dims):
    return pltpu.CompilerParams(dimension_semantics=dims,
                                vmem_limit_bytes=_vmem_limit_bytes())


def _pick_tile(hw, max_tile=MAX_TILE):
    """Largest pixel tile <= max_tile that divides hw (multiple of 128 if tiled)."""
    if hw <= max_tile:
        return hw
    for t in range(max_tile - max_tile % 128, 0, -128):
        if hw % t == 0:
            return t
    return hw  # fallback: one full-extent tile per sample


def _leaky(y):
    return jnp.where(y >= 0.0, y, SLOPE * y)


def _dot_f32(a_ref, b2d):
    """(Cout,K)@(K,T) with f32 operands/accumulation (bf16 stored upstream)."""
    return jnp.dot(a_ref[...].astype(jnp.float32), b2d.astype(jnp.float32),
                   preferred_element_type=jnp.float32)


# ----------------------------------------------------------------------------
# Layer 1: conv + bias + LeakyReLU, tiled over (sample, pixel-tile)
# ----------------------------------------------------------------------------
def _conv_act_kernel(w_ref, b_ref, p_ref, o_ref):
    y = _dot_f32(w_ref, p_ref[0]) + b_ref[...]
    o_ref[0] = _leaky(y).astype(o_ref.dtype)


def conv_act_layer(p, wt, b, *, hw, out_dtype=jnp.bfloat16):
    n, k, _ = p.shape
    cout = wt.shape[0]
    tm = _pick_tile(hw)
    return pl.pallas_call(
        _conv_act_kernel,
        out_shape=jax.ShapeDtypeStruct((n, cout, hw), out_dtype),
        grid=(n, hw // tm),
        in_specs=[
            pl.BlockSpec((cout, k), lambda i, t: (0, 0)),
            pl.BlockSpec((cout, 1), lambda i, t: (0, 0)),
            pl.BlockSpec((1, k, tm), lambda i, t: (i, 0, t)),
        ],
        out_specs=pl.BlockSpec((1, cout, tm), lambda i, t: (i, 0, t)),
        compiler_params=_compiler_params(("parallel", "parallel")),
    )(wt, b, p)


# ----------------------------------------------------------------------------
# Layer 2: conv (bias dropped) + BatchNorm2d(training) + LeakyReLU, two passes
# ----------------------------------------------------------------------------
def _conv_stats_kernel(w_ref, p_ref, y_ref, s_ref):
    @pl.when((pl.program_id(0) == 0) & (pl.program_id(1) == 0))
    def _():
        s_ref[...] = jnp.zeros_like(s_ref)

    y = _dot_f32(w_ref, p_ref[0])
    s1 = jnp.sum(y, axis=1, keepdims=True)
    s2 = jnp.sum(y * y, axis=1, keepdims=True)
    s_ref[...] += jnp.concatenate([s1, s2], axis=1)   # (Cout, 2) accumulator
    y_ref[0] = y.astype(y_ref.dtype)


def _bnorm_act_kernel(y_ref, s_ref, o_ref, *, inv_count):
    y = y_ref[0].astype(jnp.float32)
    s = s_ref[...]
    mean = s[:, 0:1] * inv_count
    var = jnp.maximum(s[:, 1:2] * inv_count - mean * mean, 0.0)
    y = (y - mean) * jax.lax.rsqrt(var + EPS)
    o_ref[0] = _leaky(y).astype(o_ref.dtype)


def conv_batchnorm_layer(p, wt, *, hw, out_dtype=jnp.bfloat16):
    n, k, _ = p.shape
    cout = wt.shape[0]
    tm = _pick_tile(hw)
    grid = (n, hw // tm)

    # Pass A: conv + batch-statistics accumulation (resident accumulator block).
    y, stats = pl.pallas_call(
        _conv_stats_kernel,
        out_shape=(jax.ShapeDtypeStruct((n, cout, hw), out_dtype),
                   jax.ShapeDtypeStruct((cout, 2), jnp.float32)),
        grid=grid,
        in_specs=[
            pl.BlockSpec((cout, k), lambda i, t: (0, 0)),
            pl.BlockSpec((1, k, tm), lambda i, t: (i, 0, t)),
        ],
        out_specs=(pl.BlockSpec((1, cout, tm), lambda i, t: (i, 0, t)),
                   pl.BlockSpec((cout, 2), lambda i, t: (0, 0))),
        compiler_params=_compiler_params(("arbitrary", "arbitrary")),
    )(wt, p)

    # Pass B: normalize + LeakyReLU, tiled and fully parallel.
    kernel = functools.partial(_bnorm_act_kernel, inv_count=1.0 / float(n * hw))
    return pl.pallas_call(
        kernel,
        out_shape=jax.ShapeDtypeStruct((n, cout, hw), out_dtype),
        grid=grid,
        in_specs=[
            pl.BlockSpec((1, cout, tm), lambda i, t: (i, 0, t)),
            pl.BlockSpec((cout, 2), lambda i, t: (0, 0)),
        ],
        out_specs=pl.BlockSpec((1, cout, tm), lambda i, t: (i, 0, t)),
        compiler_params=_compiler_params(("parallel", "parallel")),
    )(y, stats)


# ----------------------------------------------------------------------------
# Layers 3, 4: conv (bias dropped) + InstanceNorm2d + LeakyReLU, per-sample grid
# ----------------------------------------------------------------------------
def _conv_instnorm_kernel(w_ref, p_ref, o_ref):
    y = _dot_f32(w_ref, p_ref[0])
    mean = jnp.mean(y, axis=1, keepdims=True)
    var = jnp.mean(jnp.square(y - mean), axis=1, keepdims=True)
    y = (y - mean) * jax.lax.rsqrt(var + EPS)
    o_ref[0] = _leaky(y).astype(o_ref.dtype)


def conv_instnorm_layer(p, wt, *, hw, out_dtype=jnp.bfloat16):
    n, k, _ = p.shape
    cout = wt.shape[0]
    return pl.pallas_call(
        _conv_instnorm_kernel,
        out_shape=jax.ShapeDtypeStruct((n, cout, hw), out_dtype),
        grid=(n,),
        in_specs=[
            pl.BlockSpec((cout, k), lambda i: (0, 0)),
            pl.BlockSpec((1, k, hw), lambda i: (i, 0, 0)),
        ],
        out_specs=pl.BlockSpec((1, cout, hw), lambda i: (i, 0, 0)),
        compiler_params=_compiler_params(("parallel",)),
    )(wt, p)


# ----------------------------------------------------------------------------
# Layer 5: 1-channel conv + bias, fused global average pool, per-sample grid
# ----------------------------------------------------------------------------
def _conv_pool_kernel(w_ref, b_ref, p_ref, o_ref):
    y = _dot_f32(w_ref, p_ref[0]) + b_ref[...]           # (1, hw)
    o_ref[0] = jnp.mean(y, axis=1, keepdims=True).astype(o_ref.dtype)


def conv_pool_layer(p, wt, b, *, hw):
    n, k, _ = p.shape
    return pl.pallas_call(
        _conv_pool_kernel,
        out_shape=jax.ShapeDtypeStruct((n, 1, 1), jnp.float32),
        grid=(n,),
        in_specs=[
            pl.BlockSpec((1, k), lambda i: (0, 0)),
            pl.BlockSpec((1, 1), lambda i: (0, 0)),
            pl.BlockSpec((1, k, hw), lambda i: (i, 0, 0)),
        ],
        out_specs=pl.BlockSpec((1, 1, 1), lambda i: (i, 0, 0)),
        compiler_params=_compiler_params(("parallel",)),
    )(wt, b, p)


# ----------------------------------------------------------------------------
# Glue: per-sample im2col (XLA-side layout plumbing) and the full forward
# ----------------------------------------------------------------------------
def im2col(x, kh, kw, stride, pad):
    """x: (N, C, H, W) -> patches (N, kh*kw*C, Ho*Wo), Ho, Wo (pixel axis minor)."""
    n, c, h, w = x.shape
    xp = jnp.pad(x, ((0, 0), (0, 0), (pad, pad), (pad, pad)))
    ho = (h + 2 * pad - kh) // stride + 1
    wo = (w + 2 * pad - kw) // stride + 1
    taps = [
        xp[:, :, i:i + stride * ho:stride, j:j + stride * wo:stride]
        for i in range(kh)
        for j in range(kw)
    ]
    patches = jnp.concatenate(taps, axis=1)  # (N, kh*kw*C, Ho, Wo)
    return patches.reshape(n, kh * kw * c, ho * wo), ho, wo


# (stride, kind) per conv layer.  kind: None / "batch" / "instance" / "final".
_LAYER_CFG = [
    (2, None),
    (2, "batch"),
    (2, "instance"),
    (1, "instance"),
    (1, "final"),
]


def discriminator_forward(x_nchw, params):
    """Forward pass. x_nchw: (N, 3, H, W) f32 -> logits (N, 1) f32."""
    n = x_nchw.shape[0]
    x = x_nchw.astype(jnp.bfloat16)  # bf16 activation storage throughout
    for (w, b), (stride, kind) in zip(params, _LAYER_CFG):
        cout = w.shape[-1]
        # TODO(synk): in-kernel im2col from a haloed activation tile instead of
        # this XLA-side 4-16x patch expansion through HBM.
        p, ho, wo = im2col(x, 4, 4, stride, 1)           # (N, K, Ho*Wo) bf16
        hw = ho * wo
        wt = jnp.transpose(w.reshape(-1, cout)).astype(jnp.float32)  # (Cout, K)
        if kind is None:
            y = conv_act_layer(p, wt, b.reshape(cout, 1).astype(jnp.float32), hw=hw)
        elif kind == "batch":
            y = conv_batchnorm_layer(p, wt, hw=hw)       # bias cancelled by norm
        elif kind == "instance":
            y = conv_instnorm_layer(p, wt, hw=hw)        # bias cancelled by norm
        else:  # "final": 1-channel conv + bias, fused global average pool
            out = conv_pool_layer(p, wt, b.reshape(1, 1).astype(jnp.float32), hw=hw)
            return out.reshape(n, 1)
        x = y.reshape(n, cout, ho, wo)
    raise AssertionError("unreachable")


# ----------------------------------------------------------------------------
# Deterministic parameter init (PyTorch-default-like uniform, synthetic, HWIO)
# ----------------------------------------------------------------------------
def init_params(key, ndf):
    cfgs = [(3, ndf), (ndf, 2 * ndf), (2 * ndf, 4 * ndf), (4 * ndf, 8 * ndf), (8 * ndf, 1)]
    params = []
    for cin, cout in cfgs:
        key, kw_, kb_ = jax.random.split(key, 3)
        bound = 1.0 / math.sqrt(cin * 4 * 4)
        w = jax.random.uniform(kw_, (4, 4, cin, cout), jnp.float32, -bound, bound)  # HWIO
        b = jax.random.uniform(kb_, (cout,), jnp.float32, -bound, bound)
        params.append((w, b))
    return params


# ----------------------------------------------------------------------------
# Pure-JAX f32 reference (lax conv).  Layer inputs are rounded through bf16 to
# mirror the kernels' bf16 activation storage, keeping the check tight.
# ----------------------------------------------------------------------------
def reference_forward(x_nchw, params):
    dn = ("NHWC", "HWIO", "NHWC")
    y = jnp.transpose(x_nchw, (0, 2, 3, 1)).astype(jnp.bfloat16).astype(jnp.float32)
    for (w, b), (stride, kind) in zip(params, _LAYER_CFG):
        y = jax.lax.conv_general_dilated(
            y, w, (stride, stride), [(1, 1), (1, 1)], dimension_numbers=dn,
            precision=jax.lax.Precision.HIGHEST) + b
        if kind == "batch":
            m = jnp.mean(y, axis=(0, 1, 2), keepdims=True)
            v = jnp.mean(jnp.square(y - m), axis=(0, 1, 2), keepdims=True)
            y = (y - m) * jax.lax.rsqrt(v + EPS)
        elif kind == "instance":
            m = jnp.mean(y, axis=(1, 2), keepdims=True)
            v = jnp.mean(jnp.square(y - m), axis=(1, 2), keepdims=True)
            y = (y - m) * jax.lax.rsqrt(v + EPS)
        if kind == "final":
            return jnp.mean(y, axis=(1, 2)).reshape(x_nchw.shape[0], -1)
        y = jnp.where(y >= 0.0, y, SLOPE * y)
        y = y.astype(jnp.bfloat16).astype(jnp.float32)   # mirror bf16 storage
    raise AssertionError("unreachable")


if __name__ == "__main__":
    ndf = 8
    key = jax.random.PRNGKey(0)
    kx, kp = jax.random.split(key)
    # Smallest spatial size that keeps all five 4x4 convs valid: 32 -> 16 -> 8 -> 4 -> 3 -> 2.
    x = jax.random.normal(kx, (2, 3, 32, 32), jnp.float32)
    params = init_params(kp, ndf)

    fwd = jax.jit(discriminator_forward)
    out = jax.block_until_ready(fwd(x, params))
    assert out.shape == (2, 1), out.shape

    ref = jax.block_until_ready(reference_forward(x, params))
    # bf16 activation storage (f32 accumulation/stats) -> bf16-level tolerance.
    np.testing.assert_allclose(np.asarray(out), np.asarray(ref), rtol=2e-2, atol=2e-2)
    print("KERNEL_OK")
</pallas_src>

<mosaic_0001>
module attributes {stable_mosaic.version = 11 : i64} {
  func.func @_conv_act_kernel(%arg0: i32, %arg1: i32, %arg2: memref<8x48xf32, #tpu.memory_space<vmem>>, %arg3: memref<8x1xf32, #tpu.memory_space<vmem>>, %arg4: memref<1x48x256xbf16, #tpu.memory_space<vmem>>, %arg5: memref<1x8x256xbf16, #tpu.memory_space<vmem>>) attributes {dimension_semantics = [#tpu.dimension_semantics<parallel>, #tpu.dimension_semantics<parallel>], iteration_bounds = array<i64: 2, 1>, scalar_prefetch = 0 : i64, scratch_operands = 0 : i64, tpu.core_type = #tpu.core_type<tc>, window_params = [{pipeline_mode = #tpu.pipeline_mode<synchronous>, transform_indices = @transform_0, window_bounds = array<i64: 8, 48>}, {pipeline_mode = #tpu.pipeline_mode<synchronous>, transform_indices = @transform_1, window_bounds = array<i64: 8, 1>}, {transform_indices = @transform_2, window_bounds = array<i64: 1, 48, 256>}, {transform_indices = @transform_3, window_bounds = array<i64: 1, 8, 256>}]} {
    %c0 = arith.constant 0 : index
    %c0_0 = arith.constant 0 : index
    %c0_1 = arith.constant 0 : index
    %0 = vector.load %arg4[%c0, %c0_0, %c0_1] : memref<1x48x256xbf16, #tpu.memory_space<vmem>>, vector<1x48x256xbf16>
    %1 = vector.shape_cast %0 : vector<1x48x256xbf16> to vector<48x256xbf16>
    %c0_2 = arith.constant 0 : index
    %c0_3 = arith.constant 0 : index
    %2 = vector.load %arg2[%c0_2, %c0_3] : memref<8x48xf32, #tpu.memory_space<vmem>>, vector<8x48xf32>
    %3 = arith.extf %1 : vector<48x256xbf16> to vector<48x256xf32>
    %cst = arith.constant dense<0.000000e+00> : vector<8x256xf32>
    %4 = tpu.matmul %2, %3, %cst {dimension_numbers = #tpu.dot_dimension_numbers<[1], [0], [0], [1], [0, 0, 1, 1], [], []>} : vector<8x48xf32>, vector<48x256xf32>, vector<8x256xf32> -> vector<8x256xf32>
    %c0_4 = arith.constant 0 : index
    %c0_5 = arith.constant 0 : index
    %5 = vector.load %arg3[%c0_4, %c0_5] : memref<8x1xf32, #tpu.memory_space<vmem>>, vector<8x1xf32>
    %6 = vector.broadcast %5 : vector<8x1xf32> to vector<8x256xf32>
    %7 = arith.addf %4, %6 : vector<8x256xf32>
    %cst_6 = arith.constant 0.000000e+00 : f32
    %8 = vector.broadcast %cst_6 : f32 to vector<8x256xf32>
    %9 = arith.cmpf oge, %7, %8 : vector<8x256xf32>
    %cst_7 = arith.constant 2.000000e-01 : f32
    %10 = vector.broadcast %cst_7 : f32 to vector<8x256xf32>
    %11 = arith.mulf %10, %7 : vector<8x256xf32>
    %12 = arith.select %9, %7, %11 : vector<8x256xi1>, vector<8x256xf32>
    %13 = arith.truncf %12 : vector<8x256xf32> to vector<8x256xbf16>
    %c0_8 = arith.constant 0 : index
    %c0_9 = arith.constant 0 : index
    %c0_10 = arith.constant 0 : index
    %14 = vector.load %arg5[%c0_8, %c0_9, %c0_10] : memref<1x8x256xbf16, #tpu.memory_space<vmem>>, vector<1x8x256xbf16>
    %15 = vector.shape_cast %14 : vector<1x8x256xbf16> to vector<8x256xbf16>
    %16 = vector.shape_cast %13 : vector<8x256xbf16> to vector<1x8x256xbf16>
    tpu.vector_store %arg5[%c0_8, %c0_9, %c0_10], %16 {strides = array<i32>} : memref<1x8x256xbf16, #tpu.memory_space<vmem>>, vector<1x8x256xbf16>,
    return
  }
  func.func @transform_0(%arg0: i32, %arg1: i32) -> (i32, i32) {
    %c0_i32 = arith.constant 0 : i32
    %c0_i32_0 = arith.constant 0 : i32
    %c0_i32_1 = arith.constant 0 : i32
    return %c0_i32, %c0_i32_0 : i32, i32
  }
  func.func @transform_1(%arg0: i32, %arg1: i32) -> (i32, i32) {
    %c0_i32 = arith.constant 0 : i32
    %c0_i32_0 = arith.constant 0 : i32
    %c0_i32_1 = arith.constant 0 : i32
    return %c0_i32, %c0_i32_0 : i32, i32
  }
  func.func @transform_2(%arg0: i32, %arg1: i32) -> (i32, i32, i32) {
    %c0_i32 = arith.constant 0 : i32
    %c0_i32_0 = arith.constant 0 : i32
    return %arg0, %c0_i32, %arg1 : i32, i32, i32
  }
  func.func @transform_3(%arg0: i32, %arg1: i32) -> (i32, i32, i32) {
    %c0_i32 = arith.constant 0 : i32
    %c0_i32_0 = arith.constant 0 : i32
    return %arg0, %c0_i32, %arg1 : i32, i32, i32
  }
}

module attributes {stable_mosaic.version = 11 : i64} {
  func.func @_conv_stats_kernel(%arg0: i32, %arg1: i32, %arg2: memref<16x128xf32, #tpu.memory_space<vmem>>, %arg3: memref<1x128x64xbf16, #tpu.memory_space<vmem>>, %arg4: memref<1x16x64xbf16, #tpu.memory_space<vmem>>, %arg5: memref<16x2xf32, #tpu.memory_space<vmem>>) attributes {dimension_semantics = [#tpu.dimension_semantics<arbitrary>, #tpu.dimension_semantics<arbitrary>], iteration_bounds = array<i64: 2, 1>, scalar_prefetch = 0 : i64, scratch_operands = 0 : i64, tpu.core_type = #tpu.core_type<tc>, window_params = [{pipeline_mode = #tpu.pipeline_mode<synchronous>, transform_indices = @transform_0, window_bounds = array<i64: 16, 128>}, {transform_indices = @transform_1, window_bounds = array<i64: 1, 128, 64>}, {transform_indices = @transform_2, window_bounds = array<i64: 1, 16, 64>}, {pipeline_mode = #tpu.pipeline_mode<synchronous>, transform_indices = @transform_3, window_bounds = array<i64: 16, 2>}]} {
    %c0_i32 = arith.constant 0 : i32
    %0 = arith.cmpi eq, %arg0, %c0_i32 : i32
    %c0_i32_0 = arith.constant 0 : i32
    %1 = arith.cmpi eq, %arg1, %c0_i32_0 : i32
    %2 = arith.andi %0, %1 : i1
    %3 = arith.extui %2 : i1 to i32
    %c0_i32_1 = arith.constant 0 : i32
    %4 = arith.cmpi ne, %3, %c0_i32_1 : i32
    scf.if %4 {
      %cst_15 = arith.constant 0.000000e+00 : f32
      %23 = vector.broadcast %cst_15 : f32 to vector<16x2xf32>
      %c0_16 = arith.constant 0 : index
      %c0_17 = arith.constant 0 : index
      %24 = vector.load %arg5[%c0_16, %c0_17] : memref<16x2xf32, #tpu.memory_space<vmem>>, vector<16x2xf32>
      tpu.vector_store %arg5[%c0_16, %c0_17], %23 {strides = array<i32>} : memref<16x2xf32, #tpu.memory_space<vmem>>, vector<16x2xf32>,
    } else {
    }
    %c0 = arith.constant 0 : index
    %c0_2 = arith.constant 0 : index
    %c0_3 = arith.constant 0 : index
    %5 = vector.load %arg3[%c0, %c0_2, %c0_3] : memref<1x128x64xbf16, #tpu.memory_space<vmem>>, vector<1x128x64xbf16>
    %6 = vector.shape_cast %5 : vector<1x128x64xbf16> to vector<128x64xbf16>
    %c0_4 = arith.constant 0 : index
    %c0_5 = arith.constant 0 : index
    %7 = vector.load %arg2[%c0_4, %c0_5] : memref<16x128xf32, #tpu.memory_space<vmem>>, vector<16x128xf32>
    %8 = arith.extf %6 : vector<128x64xbf16> to vector<128x64xf32>
    %cst = arith.constant dense<0.000000e+00> : vector<16x64xf32>
    %9 = tpu.matmul %7, %8, %cst {dimension_numbers = #tpu.dot_dimension_numbers<[1], [0], [0], [1], [0, 0, 1, 1], [], []>} : vector<16x128xf32>, vector<128x64xf32>, vector<16x64xf32> -> vector<16x64xf32>
    %cst_6 = arith.constant dense<0.000000e+00> : vector<16xf32>
    %10 = vector.multi_reduction <add>, %9, %cst_6 [1] : vector<16x64xf32> to vector<16xf32>
    %11 = vector.shape_cast %10 : vector<16xf32> to vector<16x1xf32>
    %12 = arith.mulf %9, %9 : vector<16x64xf32>
    %cst_7 = arith.constant dense<0.000000e+00> : vector<16xf32>
    %13 = vector.multi_reduction <add>, %12, %cst_7 [1] : vector<16x64xf32> to vector<16xf32>
    %14 = vector.shape_cast %13 : vector<16xf32> to vector<16x1xf32>
    %c0_8 = arith.constant 0 : index
    %c0_9 = arith.constant 0 : index
    %15 = vector.load %arg5[%c0_8, %c0_9] : memref<16x2xf32, #tpu.memory_space<vmem>>, vector<16x2xf32>
    %16 = tpu.concatenate %11, %14 in 1 : vector<16x1xf32>, vector<16x1xf32> -> vector<16x2xf32>
    %17 = arith.addf %15, %16 : vector<16x2xf32>
    %c0_10 = arith.constant 0 : index
    %c0_11 = arith.constant 0 : index
    %18 = vector.load %arg5[%c0_10, %c0_11] : memref<16x2xf32, #tpu.memory_space<vmem>>, vector<16x2xf32>
    tpu.vector_store %arg5[%c0_10, %c0_11], %17 {strides = array<i32>} : memref<16x2xf32, #tpu.memory_space<vmem>>, vector<16x2xf32>,
    %19 = arith.truncf %9 : vector<16x64xf32> to vector<16x64xbf16>
    %c0_12 = arith.constant 0 : index
    %c0_13 = arith.constant 0 : index
    %c0_14 = arith.constant 0 : index
    %20 = vector.load %arg4[%c0_12, %c0_13, %c0_14] : memref<1x16x64xbf16, #tpu.memory_space<vmem>>, vector<1x16x64xbf16>
    %21 = vector.shape_cast %20 : vector<1x16x64xbf16> to vector<16x64xbf16>
    %22 = vector.shape_cast %19 : vector<16x64xbf16> to vector<1x16x64xbf16>
    tpu.vector_store %arg4[%c0_12, %c0_13, %c0_14], %22 {strides = array<i32>} : memref<1x16x64xbf16, #tpu.memory_space<vmem>>, vector<1x16x64xbf16>,
    return
  }
  func.func @transform_0(%arg0: i32, %arg1: i32) -> (i32, i32) {
    %c0_i32 = arith.constant 0 : i32
    %c0_i32_0 = arith.constant 0 : i32
    %c0_i32_1 = arith.constant 0 : i32
    return %c0_i32, %c0_i32_0 : i32, i32
  }
  func.func @transform_1(%arg0: i32, %arg1: i32) -> (i32, i32, i32) {
    %c0_i32 = arith.constant 0 : i32
    %c0_i32_0 = arith.constant 0 : i32
    return %arg0, %c0_i32, %arg1 : i32, i32, i32
  }
  func.func @transform_2(%arg0: i32, %arg1: i32) -> (i32, i32, i32) {
    %c0_i32 = arith.constant 0 : i32
    %c0_i32_0 = arith.constant 0 : i32
    return %arg0, %c0_i32, %arg1 : i32, i32, i32
  }
  func.func @transform_3(%arg0: i32, %arg1: i32) -> (i32, i32) {
    %c0_i32 = arith.constant 0 : i32
    %c0_i32_0 = arith.constant 0 : i32
    %c0_i32_1 = arith.constant 0 : i32
    return %c0_i32, %c0_i32_0 : i32, i32
  }
}

module attributes {stable_mosaic.version = 11 : i64} {
  func.func @_bnorm_act_kernel(%arg0: i32, %arg1: i32, %arg2: memref<1x16x64xbf16, #tpu.memory_space<vmem>>, %arg3: memref<16x2xf32, #tpu.memory_space<vmem>>, %arg4: memref<1x16x64xbf16, #tpu.memory_space<vmem>>) attributes {dimension_semantics = [#tpu.dimension_semantics<parallel>, #tpu.dimension_semantics<parallel>], iteration_bounds = array<i64: 2, 1>, scalar_prefetch = 0 : i64, scratch_operands = 0 : i64, tpu.core_type = #tpu.core_type<tc>, window_params = [{transform_indices = @transform_0, window_bounds = array<i64: 1, 16, 64>}, {pipeline_mode = #tpu.pipeline_mode<synchronous>, transform_indices = @transform_1, window_bounds = array<i64: 16, 2>}, {transform_indices = @transform_2, window_bounds = array<i64: 1, 16, 64>}]} {
    %c0 = arith.constant 0 : index
    %c0_0 = arith.constant 0 : index
    %c0_1 = arith.constant 0 : index
    %0 = vector.load %arg2[%c0, %c0_0, %c0_1] : memref<1x16x64xbf16, #tpu.memory_space<vmem>>, vector<1x16x64xbf16>
    %1 = vector.shape_cast %0 : vector<1x16x64xbf16> to vector<16x64xbf16>
    %2 = arith.extf %1 : vector<16x64xbf16> to vector<16x64xf32>
    %c0_2 = arith.constant 0 : index
    %c0_3 = arith.constant 0 : index
    %3 = vector.load %arg3[%c0_2, %c0_3] : memref<16x2xf32, #tpu.memory_space<vmem>>, vector<16x2xf32>
    %4 = vector.extract_strided_slice %3 {offsets = [0, 0], sizes = [16, 1], strides = [1, 1]} : vector<16x2xf32> to vector<16x1xf32>
    %cst = arith.constant 7.812500e-03 : f32
    %5 = vector.broadcast %cst : f32 to vector<16x1xf32>
    %6 = arith.mulf %4, %5 : vector<16x1xf32>
    %7 = vector.extract_strided_slice %3 {offsets = [0, 1], sizes = [16, 1], strides = [1, 1]} : vector<16x2xf32> to vector<16x1xf32>
    %cst_4 = arith.constant 7.812500e-03 : f32
    %8 = vector.broadcast %cst_4 : f32 to vector<16x1xf32>
    %9 = arith.mulf %7, %8 : vector<16x1xf32>
    %10 = arith.mulf %6, %6 : vector<16x1xf32>
    %11 = arith.subf %9, %10 : vector<16x1xf32>
    %cst_5 = arith.constant 0.000000e+00 : f32
    %12 = vector.broadcast %cst_5 : f32 to vector<16x1xf32>
    %13 = arith.maximumf %11, %12 : vector<16x1xf32>
    %14 = vector.broadcast %6 : vector<16x1xf32> to vector<16x64xf32>
    %15 = arith.subf %2, %14 : vector<16x64xf32>
    %cst_6 = arith.constant 9.99999974E-6 : f32
    %16 = vector.broadcast %cst_6 : f32 to vector<16x1xf32>
    %17 = arith.addf %13, %16 : vector<16x1xf32>
    %18 = math.rsqrt %17 : vector<16x1xf32>
    %19 = vector.broadcast %18 : vector<16x1xf32> to vector<16x64xf32>
    %20 = arith.mulf %15, %19 : vector<16x64xf32>
    %cst_7 = arith.constant 0.000000e+00 : f32
    %21 = vector.broadcast %cst_7 : f32 to vector<16x64xf32>
    %22 = arith.cmpf oge, %20, %21 : vector<16x64xf32>
    %cst_8 = arith.constant 2.000000e-01 : f32
    %23 = vector.broadcast %cst_8 : f32 to vector<16x64xf32>
    %24 = arith.mulf %23, %20 : vector<16x64xf32>
    %25 = arith.select %22, %20, %24 : vector<16x64xi1>, vector<16x64xf32>
    %26 = arith.truncf %25 : vector<16x64xf32> to vector<16x64xbf16>
    %c0_9 = arith.constant 0 : index
    %c0_10 = arith.constant 0 : index
    %c0_11 = arith.constant 0 : index
    %27 = vector.load %arg4[%c0_9, %c0_10, %c0_11] : memref<1x16x64xbf16, #tpu.memory_space<vmem>>, vector<1x16x64xbf16>
    %28 = vector.shape_cast %27 : vector<1x16x64xbf16> to vector<16x64xbf16>
    %29 = vector.shape_cast %26 : vector<16x64xbf16> to vector<1x16x64xbf16>
    tpu.vector_store %arg4[%c0_9, %c0_10, %c0_11], %29 {strides = array<i32>} : memref<1x16x64xbf16, #tpu.memory_space<vmem>>, vector<1x16x64xbf16>,
    return
  }
  func.func @transform_0(%arg0: i32, %arg1: i32) -> (i32, i32, i32) {
    %c0_i32 = arith.constant 0 : i32
    %c0_i32_0 = arith.constant 0 : i32
    return %arg0, %c0_i32, %arg1 : i32, i32, i32
  }
  func.func @transform_1(%arg0: i32, %arg1: i32) -> (i32, i32) {
    %c0_i32 = arith.constant 0 : i32
    %c0_i32_0 = arith.constant 0 : i32
    %c0_i32_1 = arith.constant 0 : i32
    return %c0_i32, %c0_i32_0 : i32, i32
  }
  func.func @transform_2(%arg0: i32, %arg1: i32) -> (i32, i32, i32) {
    %c0_i32 = arith.constant 0 : i32
    %c0_i32_0 = arith.constant 0 : i32
    return %arg0, %c0_i32, %arg1 : i32, i32, i32
  }
}

module attributes {stable_mosaic.version = 11 : i64} {
  func.func @_conv_instnorm_kernel(%arg0: i32, %arg1: memref<32x256xf32, #tpu.memory_space<vmem>>, %arg2: memref<1x256x16xbf16, #tpu.memory_space<vmem>>, %arg3: memref<1x32x16xbf16, #tpu.memory_space<vmem>>) attributes {dimension_semantics = [#tpu.dimension_semantics<parallel>], iteration_bounds = array<i64: 2>, scalar_prefetch = 0 : i64, scratch_operands = 0 : i64, tpu.core_type = #tpu.core_type<tc>, window_params = [{pipeline_mode = #tpu.pipeline_mode<synchronous>, transform_indices = @transform_0, window_bounds = array<i64: 32, 256>}, {transform_indices = @transform_1, window_bounds = array<i64: 1, 256, 16>}, {transform_indices = @transform_2, window_bounds = array<i64: 1, 32, 16>}]} {
    %c0 = arith.constant 0 : index
    %c0_0 = arith.constant 0 : index
    %c0_1 = arith.constant 0 : index
    %0 = vector.load %arg2[%c0, %c0_0, %c0_1] : memref<1x256x16xbf16, #tpu.memory_space<vmem>>, vector<1x256x16xbf16>
    %1 = vector.shape_cast %0 : vector<1x256x16xbf16> to vector<256x16xbf16>
    %c0_2 = arith.constant 0 : index
    %c0_3 = arith.constant 0 : index
    %2 = vector.load %arg1[%c0_2, %c0_3] : memref<32x256xf32, #tpu.memory_space<vmem>>, vector<32x256xf32>
    %3 = arith.extf %1 : vector<256x16xbf16> to vector<256x16xf32>
    %cst = arith.constant dense<0.000000e+00> : vector<32x16xf32>
    %4 = tpu.matmul %2, %3, %cst {dimension_numbers = #tpu.dot_dimension_numbers<[1], [0], [0], [1], [0, 0, 1, 1], [], []>} : vector<32x256xf32>, vector<256x16xf32>, vector<32x16xf32> -> vector<32x16xf32>
    %cst_4 = arith.constant dense<0.000000e+00> : vector<32xf32>
    %5 = vector.multi_reduction <add>, %4, %cst_4 [1] : vector<32x16xf32> to vector<32xf32>
    %6 = vector.shape_cast %5 : vector<32xf32> to vector<32x1xf32>
    %cst_5 = arith.constant 1.600000e+01 : f32
    %7 = vector.broadcast %cst_5 : f32 to vector<32x1xf32>
    %8 = arith.divf %6, %7 : vector<32x1xf32>
    %9 = vector.broadcast %8 : vector<32x1xf32> to vector<32x16xf32>
    %10 = arith.subf %4, %9 : vector<32x16xf32>
    %11 = arith.mulf %10, %10 : vector<32x16xf32>
    %cst_6 = arith.constant dense<0.000000e+00> : vector<32xf32>
    %12 = vector.multi_reduction <add>, %11, %cst_6 [1] : vector<32x16xf32> to vector<32xf32>
    %13 = vector.shape_cast %12 : vector<32xf32> to vector<32x1xf32>
    %cst_7 = arith.constant 1.600000e+01 : f32
    %14 = vector.broadcast %cst_7 : f32 to vector<32x1xf32>
    %15 = arith.divf %13, %14 : vector<32x1xf32>
    %16 = vector.broadcast %8 : vector<32x1xf32> to vector<32x16xf32>
    %17 = arith.subf %4, %16 : vector<32x16xf32>
    %cst_8 = arith.constant 9.99999974E-6 : f32
    %18 = vector.broadcast %cst_8 : f32 to vector<32x1xf32>
    %19 = arith.addf %15, %18 : vector<32x1xf32>
    %20 = math.rsqrt %19 : vector<32x1xf32>
    %21 = vector.broadcast %20 : vector<32x1xf32> to vector<32x16xf32>
    %22 = arith.mulf %17, %21 : vector<32x16xf32>
    %cst_9 = arith.constant 0.000000e+00 : f32
    %23 = vector.broadcast %cst_9 : f32 to vector<32x16xf32>
    %24 = arith.cmpf oge, %22, %23 : vector<32x16xf32>
    %cst_10 = arith.constant 2.000000e-01 : f32
    %25 = vector.broadcast %cst_10 : f32 to vector<32x16xf32>
    %26 = arith.mulf %25, %22 : vector<32x16xf32>
    %27 = arith.select %24, %22, %26 : vector<32x16xi1>, vector<32x16xf32>
    %28 = arith.truncf %27 : vector<32x16xf32> to vector<32x16xbf16>
    %c0_11 = arith.constant 0 : index
    %c0_12 = arith.constant 0 : index
    %c0_13 = arith.constant 0 : index
    %29 = vector.load %arg3[%c0_11, %c0_12, %c0_13] : memref<1x32x16xbf16, #tpu.memory_space<vmem>>, vector<1x32x16xbf16>
    %30 = vector.shape_cast %29 : vector<1x32x16xbf16> to vector<32x16xbf16>
    %31 = vector.shape_cast %28 : vector<32x16xbf16> to vector<1x32x16xbf16>
    tpu.vector_store %arg3[%c0_11, %c0_12, %c0_13], %31 {strides = array<i32>} : memref<1x32x16xbf16, #tpu.memory_space<vmem>>, vector<1x32x16xbf16>,
    return
  }
  func.func @transform_0(%arg0: i32) -> (i32, i32) {
    %c0_i32 = arith.constant 0 : i32
    %c0_i32_0 = arith.constant 0 : i32
    %c0_i32_1 = arith.constant 0 : i32
    return %c0_i32, %c0_i32_0 : i32, i32
  }
  func.func @transform_1(%arg0: i32) -> (i32, i32, i32) {
    %c0_i32 = arith.constant 0 : i32
    %c0_i32_0 = arith.constant 0 : i32
    %c0_i32_1 = arith.constant 0 : i32
    return %arg0, %c0_i32, %c0_i32_0 : i32, i32, i32
  }
  func.func @transform_2(%arg0: i32) -> (i32, i32, i32) {
    %c0_i32 = arith.constant 0 : i32
    %c0_i32_0 = arith.constant 0 : i32
    %c0_i32_1 = arith.constant 0 : i32
    return %arg0, %c0_i32, %c0_i32_0 : i32, i32, i32
  }
}

module attributes {stable_mosaic.version = 11 : i64} {
  func.func @_conv_instnorm_kernel(%arg0: i32, %arg1: memref<64x512xf32, #tpu.memory_space<vmem>>, %arg2: memref<1x512x9xbf16, #tpu.memory_space<vmem>>, %arg3: memref<1x64x9xbf16, #tpu.memory_space<vmem>>) attributes {dimension_semantics = [#tpu.dimension_semantics<parallel>], iteration_bounds = array<i64: 2>, scalar_prefetch = 0 : i64, scratch_operands = 0 : i64, tpu.core_type = #tpu.core_type<tc>, window_params = [{pipeline_mode = #tpu.pipeline_mode<synchronous>, transform_indices = @transform_0, window_bounds = array<i64: 64, 512>}, {transform_indices = @transform_1, window_bounds = array<i64: 1, 512, 9>}, {transform_indices = @transform_2, window_bounds = array<i64: 1, 64, 9>}]} {
    %c0 = arith.constant 0 : index
    %c0_0 = arith.constant 0 : index
    %c0_1 = arith.constant 0 : index
    %0 = vector.load %arg2[%c0, %c0_0, %c0_1] : memref<1x512x9xbf16, #tpu.memory_space<vmem>>, vector<1x512x9xbf16>
    %1 = vector.shape_cast %0 : vector<1x512x9xbf16> to vector<512x9xbf16>
    %c0_2 = arith.constant 0 : index
    %c0_3 = arith.constant 0 : index
    %2 = vector.load %arg1[%c0_2, %c0_3] : memref<64x512xf32, #tpu.memory_space<vmem>>, vector<64x512xf32>
    %3 = arith.extf %1 : vector<512x9xbf16> to vector<512x9xf32>
    %cst = arith.constant dense<0.000000e+00> : vector<64x9xf32>
    %4 = tpu.matmul %2, %3, %cst {dimension_numbers = #tpu.dot_dimension_numbers<[1], [0], [0], [1], [0, 0, 1, 1], [], []>} : vector<64x512xf32>, vector<512x9xf32>, vector<64x9xf32> -> vector<64x9xf32>
    %cst_4 = arith.constant dense<0.000000e+00> : vector<64xf32>
    %5 = vector.multi_reduction <add>, %4, %cst_4 [1] : vector<64x9xf32> to vector<64xf32>
    %6 = vector.shape_cast %5 : vector<64xf32> to vector<64x1xf32>
    %cst_5 = arith.constant 9.000000e+00 : f32
    %7 = vector.broadcast %cst_5 : f32 to vector<64x1xf32>
    %8 = arith.divf %6, %7 : vector<64x1xf32>
    %9 = vector.broadcast %8 : vector<64x1xf32> to vector<64x9xf32>
    %10 = arith.subf %4, %9 : vector<64x9xf32>
    %11 = arith.mulf %10, %10 : vector<64x9xf32>
    %cst_6 = arith.constant dense<0.000000e+00> : vector<64xf32>
    %12 = vector.multi_reduction <add>, %11, %cst_6 [1] : vector<64x9xf32> to vector<64xf32>
    %13 = vector.shape_cast %12 : vector<64xf32> to vector<64x1xf32>
    %cst_7 = arith.constant 9.000000e+00 : f32
    %14 = vector.broadcast %cst_7 : f32 to vector<64x1xf32>
    %15 = arith.divf %13, %14 : vector<64x1xf32>
    %16 = vector.broadcast %8 : vector<64x1xf32> to vector<64x9xf32>
    %17 = arith.subf %4, %16 : vector<64x9xf32>
    %cst_8 = arith.constant 9.99999974E-6 : f32
    %18 = vector.broadcast %cst_8 : f32 to vector<64x1xf32>
    %19 = arith.addf %15, %18 : vector<64x1xf32>
    %20 = math.rsqrt %19 : vector<64x1xf32>
    %21 = vector.broadcast %20 : vector<64x1xf32> to vector<64x9xf32>
    %22 = arith.mulf %17, %21 : vector<64x9xf32>
    %cst_9 = arith.constant 0.000000e+00 : f32
    %23 = vector.broadcast %cst_9 : f32 to vector<64x9xf32>
    %24 = arith.cmpf oge, %22, %23 : vector<64x9xf32>
    %cst_10 = arith.constant 2.000000e-01 : f32
    %25 = vector.broadcast %cst_10 : f32 to vector<64x9xf32>
    %26 = arith.mulf %25, %22 : vector<64x9xf32>
    %27 = arith.select %24, %22, %26 : vector<64x9xi1>, vector<64x9xf32>
    %28 = arith.truncf %27 : vector<64x9xf32> to vector<64x9xbf16>
    %c0_11 = arith.constant 0 : index
    %c0_12 = arith.constant 0 : index
    %c0_13 = arith.constant 0 : index
    %29 = vector.load %arg3[%c0_11, %c0_12, %c0_13] : memref<1x64x9xbf16, #tpu.memory_space<vmem>>, vector<1x64x9xbf16>
    %30 = vector.shape_cast %29 : vector<1x64x9xbf16> to vector<64x9xbf16>
    %31 = vector.shape_cast %28 : vector<64x9xbf16> to vector<1x64x9xbf16>
    tpu.vector_store %arg3[%c0_11, %c0_12, %c0_13], %31 {strides = array<i32>} : memref<1x64x9xbf16, #tpu.memory_space<vmem>>, vector<1x64x9xbf16>,
    return
  }
  func.func @transform_0(%arg0: i32) -> (i32, i32) {
    %c0_i32 = arith.constant 0 : i32
    %c0_i32_0 = arith.constant 0 : i32
    %c0_i32_1 = arith.constant 0 : i32
    return %c0_i32, %c0_i32_0 : i32, i32
  }
  func.func @transform_1(%arg0: i32) -> (i32, i32, i32) {
    %c0_i32 = arith.constant 0 : i32
    %c0_i32_0 = arith.constant 0 : i32
    %c0_i32_1 = arith.constant 0 : i32
    return %arg0, %c0_i32, %c0_i32_0 : i32, i32, i32
  }
  func.func @transform_2(%arg0: i32) -> (i32, i32, i32) {
    %c0_i32 = arith.constant 0 : i32
    %c0_i32_0 = arith.constant 0 : i32
    %c0_i32_1 = arith.constant 0 : i32
    return %arg0, %c0_i32, %c0_i32_0 : i32, i32, i32
  }
}

module attributes {stable_mosaic.version = 11 : i64} {
  func.func @_conv_pool_kernel(%arg0: i32, %arg1: memref<1x1024xf32, #tpu.memory_space<vmem>>, %arg2: memref<1x1xf32, #tpu.memory_space<vmem>>, %arg3: memref<1x1024x4xbf16, #tpu.memory_space<vmem>>, %arg4: memref<1x1x1xf32, #tpu.memory_space<vmem>>) attributes {dimension_semantics = [#tpu.dimension_semantics<parallel>], iteration_bounds = array<i64: 2>, scalar_prefetch = 0 : i64, scratch_operands = 0 : i64, tpu.core_type = #tpu.core_type<tc>, window_params = [{pipeline_mode = #tpu.pipeline_mode<synchronous>, transform_indices = @transform_0, window_bounds = array<i64: 1, 1024>}, {pipeline_mode = #tpu.pipeline_mode<synchronous>, transform_indices = @transform_1, window_bounds = array<i64: 1, 1>}, {transform_indices = @transform_2, window_bounds = array<i64: 1, 1024, 4>}, {transform_indices = @transform_3, window_bounds = array<i64: 1, 1, 1>}]} {
    %c0 = arith.constant 0 : index
    %c0_0 = arith.constant 0 : index
    %c0_1 = arith.constant 0 : index
    %0 = vector.load %arg3[%c0, %c0_0, %c0_1] : memref<1x1024x4xbf16, #tpu.memory_space<vmem>>, vector<1x1024x4xbf16>
    %1 = vector.shape_cast %0 : vector<1x1024x4xbf16> to vector<1024x4xbf16>
    %c0_2 = arith.constant 0 : index
    %c0_3 = arith.constant 0 : index
    %2 = vector.load %arg1[%c0_2, %c0_3] : memref<1x1024xf32, #tpu.memory_space<vmem>>, vector<1x1024xf32>
    %3 = arith.extf %1 : vector<1024x4xbf16> to vector<1024x4xf32>
    %cst = arith.constant dense<0.000000e+00> : vector<1x4xf32>
    %4 = tpu.matmul %2, %3, %cst {dimension_numbers = #tpu.dot_dimension_numbers<[1], [0], [0], [1], [0, 0, 1, 1], [], []>} : vector<1x1024xf32>, vector<1024x4xf32>, vector<1x4xf32> -> vector<1x4xf32>
    %c0_4 = arith.constant 0 : index
    %c0_5 = arith.constant 0 : index
    %5 = vector.load %arg2[%c0_4, %c0_5] : memref<1x1xf32, #tpu.memory_space<vmem>>, vector<1x1xf32>
    %6 = vector.broadcast %5 : vector<1x1xf32> to vector<1x4xf32>
    %7 = arith.addf %4, %6 : vector<1x4xf32>
    %cst_6 = arith.constant dense<0.000000e+00> : vector<1xf32>
    %8 = vector.multi_reduction <add>, %7, %cst_6 [1] : vector<1x4xf32> to vector<1xf32>
    %9 = vector.shape_cast %8 : vector<1xf32> to vector<1x1xf32>
    %cst_7 = arith.constant 4.000000e+00 : f32
    %10 = vector.broadcast %cst_7 : f32 to vector<1x1xf32>
    %11 = arith.divf %9, %10 : vector<1x1xf32>
    %c0_8 = arith.constant 0 : index
    %c0_9 = arith.constant 0 : index
    %c0_10 = arith.constant 0 : index
    %12 = vector.load %arg4[%c0_8, %c0_9, %c0_10] : memref<1x1x1xf32, #tpu.memory_space<vmem>>, vector<1x1x1xf32>
    %13 = vector.shape_cast %12 : vector<1x1x1xf32> to vector<1x1xf32>
    %14 = vector.shape_cast %11 : vector<1x1xf32> to vector<1x1x1xf32>
    tpu.vector_store %arg4[%c0_8, %c0_9, %c0_10], %14 {strides = array<i32>} : memref<1x1x1xf32, #tpu.memory_space<vmem>>, vector<1x1x1xf32>,
    return
  }
  func.func @transform_0(%arg0: i32) -> (i32, i32) {
    %c0_i32 = arith.constant 0 : i32
    %c0_i32_0 = arith.constant 0 : i32
    %c0_i32_1 = arith.constant 0 : i32
    return %c0_i32, %c0_i32_0 : i32, i32
  }
  func.func @transform_1(%arg0: i32) -> (i32, i32) {
    %c0_i32 = arith.constant 0 : i32
    %c0_i32_0 = arith.constant 0 : i32
    %c0_i32_1 = arith.constant 0 : i32
    return %c0_i32, %c0_i32_0 : i32, i32
  }
  func.func @transform_2(%arg0: i32) -> (i32, i32, i32) {
    %c0_i32 = arith.constant 0 : i32
    %c0_i32_0 = arith.constant 0 : i32
    %c0_i32_1 = arith.constant 0 : i32
    return %arg0, %c0_i32, %c0_i32_0 : i32, i32, i32
  }
  func.func @transform_3(%arg0: i32) -> (i32, i32, i32) {
    %c0_i32 = arith.constant 0 : i32
    %c0_i32_0 = arith.constant 0 : i32
    %c0_i32_1 = arith.constant 0 : i32
    return %arg0, %c0_i32, %c0_i32_0 : i32, i32, i32
  }
}

</mosaic_0001>

<bundles_post_ra>
// kernel: discriminator_forward.6
= control target key start
LH: loop header
LB: loop body
LE: loop exit
PB: predicated region body
PF: predicated region fallthrough
CT: control target
= control target key end

     0   :  { %s500_s12 = smov 0   ;;  %s502_s13 = smov 0   ;;  %s543_s0 = inlined_call_operand.vmem [shape: f32[8,48], index: 0, kind: input, shape index: {}]   ;;  %s544_s1 = inlined_call_operand.vmem [shape: f32[8,1], index: 1, kind: input, shape index: {}]   ;;  %s545_s2 = inlined_call_operand.vmem [shape: bf16[2,48,256], index: 2, kind: input, shape index: {}]   ;;  %s546_s3 = inlined_call_operand.vmem [shape: bf16[2,8,256], index: 3, kind: output, shape index: {}]  }
   0x1   :  { %s504_s14 = smov 0  }
   0x2 LB: > { %s25_s15 = sadd.s32 1, %s472_s13  ;;  %p416_p0 = scmp.ge.s32.totalorder %s476_s14, 1  ;;  %s476_s14 = sphi %s504_s14, %s13_s14   ;;  %s472_s13 = sphi %s502_s13, %s548_s13   ;;  %s468_s12 = sphi %s500_s12, %s547_s12  }
   0x3   : > { %p27_p1 = scmp.ge.s32.totalorder %s25_s15, 2  ;;  %p158_p2 = scmp.lt.s32.totalorder %s476_s14, 3 }
   0x5   : > { %s550_s15 = smov (%p27_p1, %s25_s15), 0  ;;  %p159_p3 = pnand %p416_p0, %p158_p2 }
   0x6   : > { %p191_p4 = scmp.lt.s32.totalorder (!%p159_p3), %s468_s12, 1 }
   0x7   : > { %162 = sbr.rel (%p159_p3) target bundleno = 234 (0xea), region = 32 }
   0xc   : > { %v229_v0 = vld [vmem:[%s544_s1] sm:$0xff]  ;;  %v478_v1 = vmov 0.0   ;;  %v479_v2 = vmov 0   ;;  %s552_s12 = smov (!%p191_p4, %s468_s12), 1  ;;  %vm235_vm0 = vcmask 392192  }
   0xd   : > { %303 = vmatprep.mubr.f32.mxu0 %v478_v1  ;;  %453 = vset.pattern.permute.xlu0 %v479_v2  ;;  %s426_s18 = smul.u32 48, %s552_s12  ;;  %v216_v21 = vld [vmem:[%s543_s0] sm:$0xff]  ;;  %s424_s24 = sshll.u32 %s552_s12, 3 }
   0xe   : > { %232 = vperm.xlu0 %453, %v229_v0   ;;  %s208_s27 = scalar_lea.vmem %s546_s3, %s424_s24 }
   0xf   : > { %s198_s21 = scalar_lea.vmem %s545_s2, %s426_s18 }
  0x10   : > { %v215_v3 = vld [vmem:[%s198_s21 + $0x28] sm:$0xff]  ;;  %v214_v4 = vld [vmem:[%s198_s21 + $0x20] sm:$0xff]  ;;  %v213_v5 = vld [vmem:[%s198_s21 + $0x18] sm:$0xff] }
  0x11   : > { %v228_v6 = vunpack.c.h.bf16 %v215_v3  ;;  %v227_v7 = vunpack.c.l.bf16 %v215_v3  ;;  %v226_v8 = vunpack.c.h.bf16 %v214_v4  ;;  %v225_v9 = vunpack.c.l.bf16 %v214_v4  ;;  %v212_v10 = vld [vmem:[%s198_s21 + $0x10] sm:$0xff]  ;;  %v211_v13 = vld [vmem:[%s198_s21 + $0x8] sm:$0xff]  ;;  %v210_v16 = vld [vmem:[%s198_s21] sm:$0xff] }
  0x12   : > { %v224_v11 = vunpack.c.h.bf16 %v213_v5  ;;  %v223_v12 = vunpack.c.l.bf16 %v213_v5  ;;  %v222_v14 = vunpack.c.h.bf16 %v212_v10  ;;  %v221_v15 = vunpack.c.l.bf16 %v212_v10 }
  0x13   : > { %259 = vmatprep.subr.mxu0 %v228_v6  ;;  %v220_v17 = vunpack.c.h.bf16 %v211_v13  ;;  %v219_v18 = vunpack.c.l.bf16 %v211_v13  ;;  %v218_v19 = vunpack.c.h.bf16 %v210_v16  ;;  %v217_v20 = vunpack.c.l.bf16 %v210_v16 }
  0x14   : > { %260 = vmatpush1.msra.mxu0 %v227_v7 }
  0x15   : > { %261 = vmatprep.subr.mxu0 %v226_v8 }
  0x16   : > { %262 = vmatpush1.msra.mxu0 %v225_v9 }
  0x17   : > { %263 = vmatprep.subr.mxu0 %v224_v11 }
  0x18   : > { %264 = vmatpush1.msra.mxu0 %v223_v12 }
  0x19   : > { %265 = vmatprep.subr.mxu0 %v222_v14 }
  0x1a   : > { %266 = vmatpush1.msra.mxu0 %v221_v15 }
  0x1b   : > { %267 = vmatprep.subr.mxu0 %v220_v17 }
  0x1c   : > { %268 = vmatpush1.msra.mxu0 %v219_v18 }
  0x1d   : > { %269 = vmatprep.subr.mxu0 %v218_v19 }
  0x1e   : > { %270 = vmatpush1.msra.mxu0 %v217_v20 }
  0x1f   : > { %420 = vmatmul.mubr.msk.f32.vlgmr.msra.gmra.mxu0 %vm235_vm0, %v216_v21 }
  0x89   : > { %v233_v22 = vpop.permute.xlu0 %232 }
  0xdf   : > { %v305_v23 = vpop.f32.mrf.mxu0 }
  0xe0   : > { %v306_v24 = vadd.f32 %v305_v23, %v233_v22 }
  0xe1   : > { %v307_v25 = vpop.f32.mrf.mxu0 }
  0xe2   : > { %v312_v26 = vmul.f32 0.2, %v306_v24  ;;  %v308_v27 = vadd.f32 %v307_v25, %v233_v22  ;;  %vm310_vm1 = vcmp.ge.f32.partialorder %v306_v24, 0.0 }
  0xe4   : > { %vm311_vm2 = vcmp.ge.f32.partialorder %v308_v27, 0.0  ;;  %v313_v28 = vmul.f32 0.2, %v308_v27  ;;  %v314_v29 = vsel %vm310_vm1, %v306_v24, %v312_v26 }
  0xe6   : > { %v315_v30 = vsel %vm311_vm2, %v308_v27, %v313_v28 }
  0xe7   : > { %v425_v31 = vpack.c.bf16 %v315_v30, %v314_v29 }
  0xe9   : > { %324 = vst [vmem:[%s208_s27] sm:$0xff] %v425_v31 }
  0xea PF: > { %s13_s14 = sadd.s32 1, %s476_s14   ;;  %s547_s12 = smov %s472_s13 }
  0xeb   : > { %p10_p5 = scmp.ge.s32.totalorder %s13_s14, 4   ;;  %s548_s13 = smov %s550_s15 }
  0xed   :  { %12 = sbr.rel (!%p10_p5) target bundleno = 2 (0x2), region = 62 }

// kernel: discriminator_forward.8
= control target key start
LH: loop header
LB: loop body
LE: loop exit
PB: predicated region body
PF: predicated region fallthrough
CT: control target
= control target key end

     0   :  { %s422_s9 = smov 0   ;;  %s424_s10 = smov 0   ;;  %s465_s0 = inlined_call_operand.vmem [shape: bf16[2,16,64], index: 0, kind: input, shape index: {}]   ;;  %s466_s1 = inlined_call_operand.vmem [shape: f32[16,2], index: 1, kind: input, shape index: {}]   ;;  %s467_s2 = inlined_call_operand.vmem [shape: bf16[2,16,64], index: 2, kind: output, shape index: {}]  }
   0x1   :  { %s426_s11 = smov 0  }
   0x2 LB: > { %s24_s12 = sadd.s32 1, %s398_s10  ;;  %p329_p0 = scmp.ge.s32.totalorder %s402_s11, 1  ;;  %s402_s11 = sphi %s426_s11, %s12_s11   ;;  %s398_s10 = sphi %s424_s10, %s469_s10   ;;  %s394_s9 = sphi %s422_s9, %s468_s9  }
   0x3   : > { %p26_p1 = scmp.ge.s32.totalorder %s24_s12, 2  ;;  %p131_p2 = scmp.lt.s32.totalorder %s402_s11, 3 }
   0x5   : > { %s471_s12 = smov (%p26_p1, %s24_s12), 0  ;;  %p132_p3 = pnand %p329_p0, %p131_p2 }
   0x6   : > { %s406_s17 = smov (!%p132_p3), 1   ;;  %p159_p4 = scmp.lt.s32.totalorder (!%p132_p3), %s394_s9, 1 }
   0x7   : > { %135 = sbr.rel (%p132_p3) target bundleno = 288 (0x120), region = 28 }
   0xc   : > { %v179_v0 = vld [vmem:[%s466_s1] sm:$0xff]  ;;  %v180_v1 = vld [vmem:[%s466_s1 + $0x8] sm:$0xff]  ;;  %v404_v4 = vmov 0   ;;  %v405_v6 = vmov 1   ;;  %s473_s9 = smov (!%p159_p4, %s394_s9), 1  ;;  %vm239_vm1 = vcmask 519168  }
   0xd   : > { %v181_v2 = vmul.f32 0.0078125, %v179_v0  ;;  %v182_v3 = vmul.f32 0.0078125, %v180_v1  ;;  %373 = vset.pattern.permute.xlu1 %v404_v4  ;;  %374 = vset.pattern.permute.xlu0 %v405_v6  ;;  %s338_s18 = sshll.u32 %s473_s9, 3 }
   0xe   : > { %s166_s21 = scalar_lea.vmem %s465_s0, %s338_s18  ;;  %s174_s24 = scalar_lea.vmem %s467_s2, %s338_s18 }
   0xf   : > { %v183_v5 = vmul.f32 %v181_v2, %v181_v2  ;;  %199 = vperm.xlu1 %373, %v181_v2   ;;  %v184_v7 = vmul.f32 %v182_v3, %v182_v3  ;;  %v343_v18 = vld [vmem:[%s166_s21] sm:$0xff]  }
  0x10   : > { %v344_v20 = vunpack.c.l.bf16 %v343_v18  ;;  %v345_v22 = vunpack.c.h.bf16 %v343_v18 }
  0x11   : > { %187 = vrot.lane.b32.xlu0 %v183_v5, %s406_s17 }
  0x13   : > { %204 = vperm.xlu1 %373, %v182_v3  }
  0x15   : > { %189 = vrot.lane.b32.xlu0 %v184_v7, %s406_s17 }
  0x17   : > { %375 = vset.pattern.permute.xlu1 %v405_v6 }
  0x83   : > { %v188_v8 = vpop.permute.xlu0 %187 }
  0x84   : > { %v193_v9 = vsub.f32 %v181_v2, %v188_v8 }
  0x86   : > { %v195_v10 = vmax.f32 %v193_v9, 0.0 }
  0x87   : > { %v190_v11 = vpop.permute.xlu0 %189 }
  0x88   : > { %v209_v12 = vadd.f32 1e-05, %v195_v10  ;;  %v194_v13 = vsub.f32 %v182_v3, %v190_v11 }
  0x8a   : > { %376 = vrsqrt.f32 %v209_v12  ;;  %v196_v14 = vmax.f32 %v194_v13, 0.0  ;;  %v200_v19 = vpop.permute.xlu1 %199 }
  0x8b   : > { %v207_v21 = vsub.f32 %v344_v20, %v200_v19 }
  0x8c   : > { %v210_v15 = vadd.f32 1e-05, %v196_v14 }
  0x8e   : > { %378 = vrsqrt.f32 %v210_v15  ;;  %v205_v23 = vpop.permute.xlu1 %204 }
  0x8f   : > { %v208_v26 = vsub.f32 %v345_v22, %v205_v23 }
  0x97   : > { %v377_v16 = vpop.eup %376 }
  0x98   : > { %215 = vperm.xlu0 %374, %v377_v16  }
  0x9b   : > { %v379_v17 = vpop.eup %378 }
  0x9c   : > { %220 = vperm.xlu1 %375, %v379_v17  }
 0x113   : > { %v216_v24 = vpop.permute.xlu0 %215 }
 0x114   : > { %v223_v25 = vmul.f32 %v216_v24, %v207_v21 }
 0x116   : > { %vm225_vm0 = vcmp.ge.f32.partialorder %v223_v25, 0.0  ;;  %v227_v27 = vmul.f32 0.2, %v223_v25 }
 0x117   : > { %v221_v28 = vpop.permute.xlu1 %220 }
 0x118   : > { %v229_v29 = vsel %vm225_vm0, %v223_v25, %v227_v27  ;;  %v224_v30 = vmul.f32 %v221_v28, %v208_v26 }
 0x119   : > { %v340_v31 = vpack.c.bf16 %v229_v29, %v229_v29 }
 0x11a   : > { %vm226_vm2 = vcmp.ge.f32.partialorder %v224_v30, 0.0  ;;  %v228_v32 = vmul.f32 0.2, %v224_v30 }
 0x11b   : > { %240 = vst.msk [vmem:[%s174_s24] sm:$0xf] %vm239_vm1, %v340_v31 }
 0x11c   : > { %v230_v33 = vsel %vm226_vm2, %v224_v30, %v228_v32 }
 0x11d   : > { %v341_v34 = vpack.c.bf16 %v230_v33, %v230_v33 }
 0x11f   : > { %241 = vst.msk [vmem:[%s174_s24 + $0x4] sm:$0xf] %vm239_vm1, %v341_v34 }
 0x120 PF: > { %s12_s11 = sadd.s32 1, %s402_s11   ;;  %s468_s9 = smov %s398_s10 }
 0x121   : > { %p9_p5 = scmp.ge.s32.totalorder %s12_s11, 4   ;;  %s469_s10 = smov %s471_s12 }
 0x123   :  { %11 = sbr.rel (!%p9_p5) target bundleno = 2 (0x2), region = 58 }

// kernel: discriminator_forward.7
= control target key start
LH: loop header
LB: loop body
LE: loop exit
PB: predicated region body
PF: predicated region fallthrough
CT: control target
= control target key end

     0   :  { %s624_s12 = smov 0   ;;  %s626_s13 = smov 0   ;;  %s695_s0 = inlined_call_operand.vmem [shape: f32[16,128], index: 0, kind: input, shape index: {}]   ;;  %s696_s1 = inlined_call_operand.vmem [shape: bf16[2,128,64], index: 1, kind: input, shape index: {}]   ;;  %s697_s2 = inlined_call_operand.vmem [shape: bf16[2,16,64], index: 2, kind: output, shape index: {0}]   ;;  %s698_s3 = inlined_call_operand.vmem [shape: f32[16,2], index: 3, kind: output, shape index: {1}]  }
   0x1   :  { %s628_s14 = smov 0  }
   0x2 LB: > { %s26_s15 = sadd.s32 1, %s597_s13  ;;  %p447_p0 = scmp.ge.s32.totalorder %s601_s14, 1  ;;  %s601_s14 = sphi %s628_s14, %s14_s14   ;;  %s597_s13 = sphi %s626_s13, %s700_s13   ;;  %s593_s12 = sphi %s624_s12, %s699_s12  }
   0x3   : > { %p28_p1 = scmp.ge.s32.totalorder %s26_s15, 2  ;;  %p154_p2 = scmp.lt.s32.totalorder %s601_s14, 3 }
   0x5   : > { %s702_s15 = smov (%p28_p1, %s26_s15), 0  ;;  %p155_p3 = pnand %p447_p0, %p154_p2 }
   0x6   : > { %p184_p4 = scmp.lt.s32.totalorder (!%p155_p3), %s593_s12, 1  ;;  %p200_p5 = scmp.eq.s32.totalorder (!%p155_p3), %s593_s12, 0 }
   0x7   : > { %158 = sbr.rel (%p155_p3) target bundleno = 396 (0x18c), region = 28 }
   0xc   : > { %s704_s12 = smov (!%p184_p4, %s593_s12), 1  ;;  %205 = sbr.rel (!%p200_p5) target bundleno = 17 (0x11), region = 32  ;;  %vm206_vm0 = vcmask (%p200_p5), 15360   ;;  %v603_v0 = vmov (%p200_p5), 0.0  }
   0xd   : > { %s457_s16 = sshll.u32 %s704_s12, 6  ;;  %s458_s17 = sshll.u32 %s704_s12, 3  ;;  %207 = vst.msk [vmem:[%s698_s3] sm:$0xff] (%p200_p5), %vm206_vm0, %v603_v0  ;;  %208 = vst.msk [vmem:[%s698_s3 + $0x8] sm:$0xff] (%p200_p5), %vm206_vm0, %v603_v0 }
   0xe   : > { %s645_s20 = scalar_lea.vmem %s696_s1, %s457_s16  ;;  %s650_s23 = scalar_lea.vmem %s697_s2, %s458_s17 }
  0x11 PF: > { %v500_v1 = vld [vmem:[%s645_s20 + $0x38] sm:$0xff]   ;;  %v499_v2 = vld [vmem:[%s645_s20 + $0x30] sm:$0xff]   ;;  %v225_v5 = vld [vmem:[%s695_s0] sm:$0xff]  ;;  %vm351_vm1 = vcmask 519168   ;;  %vm318_vm2 = vcmask 523264   ;;  %vm335_vm3 = vcmask 7168  }
  0x12   : > { %v492_v3 = vunpack.c.l.bf16 %v500_v1  ;;  %v493_v4 = vunpack.c.h.bf16 %v500_v1  ;;  %v489_v6 = vunpack.c.h.bf16 %v499_v2  ;;  %551 = vmatprep.mubr.f32.mxu0 %v225_v5  ;;  %v498_v7 = vld [vmem:[%s645_s20 + $0x28] sm:$0xff]   ;;  %v488_v8 = vunpack.c.l.bf16 %v499_v2  ;;  %v497_v10 = vld [vmem:[%s645_s20 + $0x20] sm:$0xff]   ;;  %v496_v13 = vld [vmem:[%s645_s20 + $0x18] sm:$0xff]  }
  0x13   : > { %v485_v9 = vunpack.c.h.bf16 %v498_v7  ;;  %v484_v11 = vunpack.c.l.bf16 %v498_v7  ;;  %v481_v12 = vunpack.c.h.bf16 %v497_v10  ;;  %v480_v14 = vunpack.c.l.bf16 %v497_v10  ;;  %v495_v16 = vld [vmem:[%s645_s20 + $0x10] sm:$0xff]   ;;  %v494_v19 = vld [vmem:[%s645_s20 + $0x8] sm:$0xff]   ;;  %v463_v22 = vld [vmem:[%s645_s20] sm:$0xff]  }
  0x14   : > { %519 = vmatprep.subr.mxu0 %v493_v4  ;;  %v477_v15 = vunpack.c.h.bf16 %v496_v13  ;;  %v476_v17 = vunpack.c.l.bf16 %v496_v13  ;;  %v473_v18 = vunpack.c.h.bf16 %v495_v16  ;;  %v472_v20 = vunpack.c.l.bf16 %v495_v16  ;;  %v226_v26 = vld [vmem:[%s695_s0 + $0x8] sm:$0xff]  ;;  %v333_v38 = vld [vmem:[%s698_s3] sm:$0xff] }
  0x15   : > { %520 = vmatpush3.msra.mxu0 %v493_v4  ;;  %v469_v21 = vunpack.c.h.bf16 %v494_v19  ;;  %v468_v23 = vunpack.c.l.bf16 %v494_v19  ;;  %v465_v24 = vunpack.c.h.bf16 %v463_v22  ;;  %v464_v25 = vunpack.c.l.bf16 %v463_v22  ;;  %v334_v42 = vld [vmem:[%s698_s3 + $0x8] sm:$0xff] }
  0x16   : > { %521 = vmatprep.subr.mxu0 %v492_v3  ;;  %vm340_vm4 = vcmask 15360  }
  0x17   : > { %522 = vmatpush3.msra.mxu0 %v492_v3 }
  0x18   : > { %523 = vmatprep.subr.mxu0 %v489_v6 }
  0x19   : > { %524 = vmatpush3.msra.mxu0 %v489_v6 }
  0x1a   : > { %525 = vmatprep.subr.mxu0 %v488_v8 }
  0x1b   : > { %526 = vmatpush3.msra.mxu0 %v488_v8 }
  0x1c   : > { %527 = vmatprep.subr.mxu0 %v485_v9 }
  0x1d   : > { %528 = vmatpush3.msra.mxu0 %v485_v9 }
  0x1e   : > { %529 = vmatprep.subr.mxu0 %v484_v11 }
  0x1f   : > { %530 = vmatpush3.msra.mxu0 %v484_v11 }
  0x20   : > { %531 = vmatprep.subr.mxu0 %v481_v12 }
  0x21   : > { %532 = vmatpush3.msra.mxu0 %v481_v12 }
  0x22   : > { %533 = vmatprep.subr.mxu0 %v480_v14 }
  0x23   : > { %534 = vmatpush3.msra.mxu0 %v480_v14 }
  0x24   : > { %535 = vmatprep.subr.mxu0 %v477_v15 }
  0x25   : > { %536 = vmatpush3.msra.mxu0 %v477_v15 }
  0x26   : > { %537 = vmatprep.subr.mxu0 %v476_v17 }
  0x27   : > { %538 = vmatpush3.msra.mxu0 %v476_v17 }
  0x28   : > { %539 = vmatprep.subr.mxu0 %v473_v18 }
  0x29   : > { %540 = vmatpush3.msra.mxu0 %v473_v18 }
  0x2a   : > { %541 = vmatprep.subr.mxu0 %v472_v20 }
  0x2b   : > { %542 = vmatpush3.msra.mxu0 %v472_v20 }
  0x2c   : > { %543 = vmatprep.subr.mxu0 %v469_v21 }
  0x2d   : > { %544 = vmatpush3.msra.mxu0 %v469_v21 }
  0x2e   : > { %545 = vmatprep.subr.mxu0 %v468_v23 }
  0x2f   : > { %546 = vmatpush3.msra.mxu0 %v468_v23 }
  0x30   : > { %547 = vmatprep.subr.mxu0 %v465_v24 }
  0x31   : > { %548 = vmatpush3.msra.mxu0 %v465_v24 }
  0x32   : > { %549 = vmatprep.subr.mxu0 %v464_v25 }
  0x33   : > { %550 = vmatpush3.msra.mxu0 %v464_v25 }
  0x34   : > { %552 = vmatmul.mubr.f32.vlgmr.msra.gmra.mxu0 %v226_v26 }
  0xf4   : > { %v553_v27 = vpop.f32.mrf.mxu0 }
  0xf5   : > { %v461_v28 = vpack.c.bf16 %v553_v27, %v553_v27  ;;  %v326_v34 = vmul.f32 %v553_v27, %v553_v27  ;;  %v322_v35 = vsel %vm318_vm2, %v553_v27, 0.0 }
  0xf6   : > { %v309_v29 = vpop.f32.mrf.mxu0 }
  0xf7   : > { %v460_v30 = vpack.c.bf16 %v309_v29, %v309_v29  ;;  %353 = vst.msk [vmem:[%s650_s23 + $0x4] sm:$0xf] %vm351_vm1, %v461_v28  ;;  %v319_v31 = vsel %vm318_vm2, %v309_v29, 0.0  ;;  %v325_v32 = vmul.f32 %v309_v29, %v309_v29  ;;  %v330_v36 = vsel %vm318_vm2, %v326_v34, 0.0 }
  0xf8   : > { %320 = vadd.xlane.f32.xlu0 %v319_v31 }
  0xf9   : > { %352 = vst.msk [vmem:[%s650_s23] sm:$0xf] %vm351_vm1, %v460_v30  ;;  %v327_v33 = vsel %vm318_vm2, %v325_v32, 0.0 }
  0xfa   : > { %328 = vadd.xlane.f32.xlu1 %v327_v33 }
  0xfc   : > { %323 = vadd.xlane.f32.xlu0 %v322_v35 }
  0xfe   : > { %331 = vadd.xlane.f32.xlu1 %v330_v36 }
 0x181   : > { %v321_v37 = vpop.xlane.xlu0 %320 }
 0x183   : > { %v329_v39 = vpop.xlane.xlu1 %328 }
 0x184   : > { %v336_v40 = vsel %vm335_vm3, %v321_v37, %v329_v39 }
 0x185   : > { %v338_v41 = vadd.f32 %v336_v40, %v333_v38  ;;  %v324_v43 = vpop.xlane.xlu0 %323 }
 0x187   : > { %341 = vst.msk [vmem:[%s698_s3] sm:$0xff] %vm340_vm4, %v338_v41  ;;  %v332_v44 = vpop.xlane.xlu1 %331 }
 0x188   : > { %v337_v45 = vsel %vm335_vm3, %v324_v43, %v332_v44 }
 0x189   : > { %v339_v46 = vadd.f32 %v337_v45, %v334_v42 }
 0x18b   : > { %342 = vst.msk [vmem:[%s698_s3 + $0x8] sm:$0xff] %vm340_vm4, %v339_v46 }
 0x18c PF: > { %s14_s14 = sadd.s32 1, %s601_s14   ;;  %s699_s12 = smov %s597_s13 }
 0x18d   : > { %p11_p6 = scmp.ge.s32.totalorder %s14_s14, 4   ;;  %s700_s13 = smov %s702_s15 }
 0x18f   :  { %13 = sbr.rel (!%p11_p6) target bundleno = 2 (0x2), region = 70 }

// kernel: discriminator_forward.9
= control target key start
LH: loop header
LB: loop body
LE: loop exit
PB: predicated region body
PF: predicated region fallthrough
CT: control target
= control target key end

     0   :  { %s658_s9 = smov 0   ;;  %s733_s0 = inlined_call_operand.vmem [shape: f32[32,256], index: 0, kind: input, shape index: {}]   ;;  %s734_s1 = inlined_call_operand.vmem [shape: bf16[2,256,16], index: 1, kind: input, shape index: {}]   ;;  %s735_s2 = inlined_call_operand.vmem [shape: bf16[2,32,16], index: 2, kind: output, shape index: {}]  }
   0x1 LB: > { %s443_s10 = sadd.s32 4294967295, %s641_s9   ;;  %p447_p0 = scmp.ge.s32.totalorder %s641_s9, 1  ;;  %s641_s9 = sphi %s658_s9, %s12_s9  }
   0x2   : > { %p112_p1 = scmp.lt.s32.totalorder %s641_s9, 3 }
   0x4   : > { %p113_p2 = pnand %p447_p0, %p112_p1 }
   0x5   : > { %p134_p3 = scmp.lt.s32.totalorder (!%p113_p2), %s443_s10, 1 }
   0x6   : > { %116 = sbr.rel (%p113_p2) target bundleno = 564 (0x234), region = 28 }
   0xb   : > { %v177_v0 = vld [vmem:[%s733_s0 + $0x8] sm:$0xff]  ;;  %s737_s10 = smov (!%p134_p3, %s443_s10), 1  ;;  %v176_v50 = vld [vmem:[%s733_s0] sm:$0xff]  ;;  %v179_v52 = vld [vmem:[%s733_s0 + $0x18] sm:$0xff]  ;;  %vm301_vm0 = vcmask 130048   ;;  %vm383_vm2 = vcmask 125952  }
   0xc   : > { %v181_v1 = vld [vmem:[%s733_s0 + $0x28] sm:$0xff]  ;;  %280 = vmatprep.mubr.f32.mxu0 %v177_v0  ;;  %s458_s15 = sshll.u32 %s737_s10, 7  ;;  %v180_v51 = vld [vmem:[%s733_s0 + $0x20] sm:$0xff]  ;;  %v183_v53 = vld [vmem:[%s733_s0 + $0x38] sm:$0xff]  ;;  %s459_s3 = sshll.u32 %s737_s10, 4 }
   0xd   : > { %290 = vmatprep.mubr.f32.mxu1 %v181_v1  ;;  %s678_s18 = scalar_lea.vmem %s734_s1, %s458_s15  ;;  %v178_v54 = vld [vmem:[%s733_s0 + $0x10] sm:$0xff]  ;;  %s143_s6 = scalar_lea.vmem %s735_s2, %s459_s3 }
   0xe   : > { %v542_v2 = vld [vmem:[%s678_s18 + $0x78] sm:$0xff]   ;;  %v541_v4 = vld [vmem:[%s678_s18 + $0x70] sm:$0xff]   ;;  %v540_v12 = vld [vmem:[%s678_s18 + $0x68] sm:$0xff]  }
   0xf   : > { %v534_v3 = vld [vmem:[%s678_s18 + $0x38] sm:$0xff]   ;;  %v526_v5 = vunpack.c.l.bf16 %v542_v2  ;;  %v527_v6 = vunpack.c.h.bf16 %v542_v2  ;;  %v533_v8 = vld [vmem:[%s678_s18 + $0x30] sm:$0xff]   ;;  %v523_v10 = vunpack.c.h.bf16 %v541_v4  ;;  %v522_v13 = vunpack.c.l.bf16 %v541_v4  ;;  %v532_v14 = vld [vmem:[%s678_s18 + $0x28] sm:$0xff]  }
  0x10   : > { %v495_v7 = vunpack.c.h.bf16 %v534_v3  ;;  %v494_v9 = vunpack.c.l.bf16 %v534_v3  ;;  %v491_v11 = vunpack.c.h.bf16 %v533_v8  ;;  %v490_v15 = vunpack.c.l.bf16 %v533_v8  ;;  %v539_v18 = vld [vmem:[%s678_s18 + $0x60] sm:$0xff]   ;;  %v538_v24 = vld [vmem:[%s678_s18 + $0x58] sm:$0xff]   ;;  %v537_v30 = vld [vmem:[%s678_s18 + $0x50] sm:$0xff]  }
  0x11   : > { %543 = vmatprep.subr.mxu0 %v527_v6  ;;  %587 = vmatprep.subr.mxu1 %v527_v6  ;;  %v519_v16 = vunpack.c.h.bf16 %v540_v12  ;;  %v487_v17 = vunpack.c.h.bf16 %v532_v14  ;;  %v518_v19 = vunpack.c.l.bf16 %v540_v12  ;;  %v531_v20 = vld [vmem:[%s678_s18 + $0x20] sm:$0xff]   ;;  %v486_v21 = vunpack.c.l.bf16 %v532_v14  ;;  %v530_v26 = vld [vmem:[%s678_s18 + $0x18] sm:$0xff]   ;;  %v529_v32 = vld [vmem:[%s678_s18 + $0x10] sm:$0xff]  }
  0x12   : > { %544 = vmatpush3.msra.mxu0 %v495_v7  ;;  %603 = vmatpush3.msra.mxu1 %v495_v7  ;;  %v515_v22 = vunpack.c.h.bf16 %v539_v18  ;;  %v483_v23 = vunpack.c.h.bf16 %v531_v20  ;;  %v514_v25 = vunpack.c.l.bf16 %v539_v18  ;;  %v482_v27 = vunpack.c.l.bf16 %v531_v20  ;;  %v536_v36 = vld [vmem:[%s678_s18 + $0x48] sm:$0xff]   ;;  %v535_v42 = vld [vmem:[%s678_s18 + $0x40] sm:$0xff]   ;;  %v182_v55 = vld [vmem:[%s733_s0 + $0x30] sm:$0xff] }
  0x13   : > { %545 = vmatprep.subr.mxu0 %v526_v5  ;;  %588 = vmatprep.subr.mxu1 %v526_v5  ;;  %v511_v28 = vunpack.c.h.bf16 %v538_v24  ;;  %v479_v29 = vunpack.c.h.bf16 %v530_v26  ;;  %v510_v31 = vunpack.c.l.bf16 %v538_v24  ;;  %v478_v33 = vunpack.c.l.bf16 %v530_v26  ;;  %v528_v38 = vld [vmem:[%s678_s18 + $0x8] sm:$0xff]   ;;  %v465_v44 = vld [vmem:[%s678_s18] sm:$0xff]  }
  0x14   : > { %546 = vmatpush3.msra.mxu0 %v494_v9  ;;  %604 = vmatpush3.msra.mxu1 %v494_v9  ;;  %v507_v34 = vunpack.c.h.bf16 %v537_v30  ;;  %v475_v35 = vunpack.c.h.bf16 %v529_v32  ;;  %v506_v37 = vunpack.c.l.bf16 %v537_v30  ;;  %v474_v39 = vunpack.c.l.bf16 %v529_v32 }
  0x15   : > { %547 = vmatprep.subr.mxu0 %v523_v10  ;;  %589 = vmatprep.subr.mxu1 %v523_v10  ;;  %v503_v40 = vunpack.c.h.bf16 %v536_v36  ;;  %v471_v41 = vunpack.c.h.bf16 %v528_v38  ;;  %v502_v43 = vunpack.c.l.bf16 %v536_v36  ;;  %v470_v45 = vunpack.c.l.bf16 %v528_v38 }
  0x16   : > { %548 = vmatpush3.msra.mxu0 %v491_v11  ;;  %605 = vmatpush3.msra.mxu1 %v491_v11  ;;  %v499_v46 = vunpack.c.h.bf16 %v535_v42  ;;  %v467_v47 = vunpack.c.h.bf16 %v465_v44  ;;  %v498_v48 = vunpack.c.l.bf16 %v535_v42  ;;  %v466_v49 = vunpack.c.l.bf16 %v465_v44 }
  0x17   : > { %549 = vmatprep.subr.mxu0 %v522_v13  ;;  %590 = vmatprep.subr.mxu1 %v522_v13 }
  0x18   : > { %550 = vmatpush3.msra.mxu0 %v490_v15  ;;  %606 = vmatpush3.msra.mxu1 %v490_v15 }
  0x19   : > { %551 = vmatprep.subr.mxu0 %v519_v16  ;;  %591 = vmatprep.subr.mxu1 %v519_v16 }
  0x1a   : > { %552 = vmatpush3.msra.mxu0 %v487_v17  ;;  %607 = vmatpush3.msra.mxu1 %v487_v17 }
  0x1b   : > { %553 = vmatprep.subr.mxu0 %v518_v19  ;;  %592 = vmatprep.subr.mxu1 %v518_v19 }
  0x1c   : > { %554 = vmatpush3.msra.mxu0 %v486_v21  ;;  %608 = vmatpush3.msra.mxu1 %v486_v21 }
  0x1d   : > { %555 = vmatprep.subr.mxu0 %v515_v22  ;;  %593 = vmatprep.subr.mxu1 %v515_v22 }
  0x1e   : > { %556 = vmatpush3.msra.mxu0 %v483_v23  ;;  %609 = vmatpush3.msra.mxu1 %v483_v23 }
  0x1f   : > { %557 = vmatprep.subr.mxu0 %v514_v25  ;;  %594 = vmatprep.subr.mxu1 %v514_v25 }
  0x20   : > { %558 = vmatpush3.msra.mxu0 %v482_v27  ;;  %610 = vmatpush3.msra.mxu1 %v482_v27 }
  0x21   : > { %559 = vmatprep.subr.mxu0 %v511_v28  ;;  %595 = vmatprep.subr.mxu1 %v511_v28 }
  0x22   : > { %560 = vmatpush3.msra.mxu0 %v479_v29  ;;  %611 = vmatpush3.msra.mxu1 %v479_v29 }
  0x23   : > { %561 = vmatprep.subr.mxu0 %v510_v31  ;;  %596 = vmatprep.subr.mxu1 %v510_v31 }
  0x24   : > { %562 = vmatpush3.msra.mxu0 %v478_v33  ;;  %612 = vmatpush3.msra.mxu1 %v478_v33 }
  0x25   : > { %563 = vmatprep.subr.mxu0 %v507_v34  ;;  %597 = vmatprep.subr.mxu1 %v507_v34 }
  0x26   : > { %564 = vmatpush3.msra.mxu0 %v475_v35  ;;  %613 = vmatpush3.msra.mxu1 %v475_v35 }
  0x27   : > { %565 = vmatprep.subr.mxu0 %v506_v37  ;;  %598 = vmatprep.subr.mxu1 %v506_v37 }
  0x28   : > { %566 = vmatpush3.msra.mxu0 %v474_v39  ;;  %614 = vmatpush3.msra.mxu1 %v474_v39 }
  0x29   : > { %567 = vmatprep.subr.mxu0 %v503_v40  ;;  %599 = vmatprep.subr.mxu1 %v503_v40 }
  0x2a   : > { %568 = vmatpush3.msra.mxu0 %v471_v41  ;;  %615 = vmatpush3.msra.mxu1 %v471_v41 }
  0x2b   : > { %569 = vmatprep.subr.mxu0 %v502_v43  ;;  %600 = vmatprep.subr.mxu1 %v502_v43 }
  0x2c   : > { %570 = vmatpush3.msra.mxu0 %v470_v45  ;;  %616 = vmatpush3.msra.mxu1 %v470_v45 }
  0x2d   : > { %571 = vmatprep.subr.mxu0 %v499_v46  ;;  %601 = vmatprep.subr.mxu1 %v499_v46 }
  0x2e   : > { %572 = vmatpush3.msra.mxu0 %v467_v47  ;;  %617 = vmatpush3.msra.mxu1 %v467_v47 }
  0x2f   : > { %573 = vmatprep.subr.mxu0 %v498_v48  ;;  %602 = vmatprep.subr.mxu1 %v498_v48 }
  0x30   : > { %574 = vmatpush3.msra.mxu0 %v466_v49  ;;  %618 = vmatpush3.msra.mxu1 %v466_v49 }
  0x31   : > { %281 = vmatmul.mubr.f32.vlgmr.msra.gmra.mxu0 %v176_v50  ;;  %291 = vmatmul.mubr.f32.vlgmr.msra.gmra.mxu1 %v180_v51 }
  0x32   : > { %285 = vmatprep.mubr.f32.mxu0 %v179_v52  ;;  %295 = vmatprep.mubr.f32.mxu1 %v183_v53 }
  0x35   : > { %286 = vmatmul.mubr.f32.gmra.mxu0 %v178_v54  ;;  %296 = vmatmul.mubr.f32.gmra.mxu1 %v182_v55 }
  0xf1   : > { %v575_v56 = vpop.f32.mrf.mxu0  ;;  %v581_v57 = vpop.f32.mrf.mxu1 }
  0xf3   : > { %v576_v58 = vpop.f32.mrf.mxu0  ;;  %v582_v59 = vpop.f32.mrf.mxu1 }
  0xf4   : > { %v577_v60 = vadd.f32 %v576_v58, %v575_v56  ;;  %v583_v61 = vadd.f32 %v582_v59, %v581_v57 }
  0xf5   : > { %v578_v62 = vpop.f32.mrf.mxu0  ;;  %v584_v63 = vpop.f32.mrf.mxu1 }
  0xf6   : > { %v308_v0 = vsel %vm301_vm0, %v583_v61, 0.0  ;;  %v302_v1 = vsel %vm301_vm0, %v577_v60, 0.0 }
  0xf7   : > { %v585_v2 = vpop.f32.mrf.mxu1  ;;  %309 = vadd.xlane.f32.xlu1 %v308_v0  ;;  %v579_v3 = vpop.f32.mrf.mxu0  ;;  %303 = vadd.xlane.f32.xlu0 %v302_v1 }
  0xf8   : > { %v586_v4 = vadd.f32 %v585_v2, %v584_v63  ;;  %v580_v5 = vadd.f32 %v579_v3, %v578_v62 }
  0xfa   : > { %v311_v6 = vsel %vm301_vm0, %v586_v4, 0.0  ;;  %v305_v7 = vsel %vm301_vm0, %v580_v5, 0.0 }
  0xfb   : > { %312 = vadd.xlane.f32.xlu1 %v311_v6  ;;  %306 = vadd.xlane.f32.xlu0 %v305_v7 }
 0x180   : > { %v310_v8 = vpop.xlane.xlu1 %309  ;;  %v304_v9 = vpop.xlane.xlu0 %303 }
 0x181   : > { %v317_v10 = vmul.f32 0.0625, %v310_v8  ;;  %v315_v11 = vmul.f32 0.0625, %v304_v9 }
 0x183   : > { %v321_v12 = vsub.f32 %v583_v61, %v317_v10  ;;  %v319_v13 = vsub.f32 %v577_v60, %v315_v11 }
 0x184   : > { %v313_v14 = vpop.xlane.xlu1 %312  ;;  %v307_v15 = vpop.xlane.xlu0 %306 }
 0x185   : > { %v318_v16 = vmul.f32 0.0625, %v313_v14  ;;  %v316_v17 = vmul.f32 0.0625, %v307_v15  ;;  %v323_v18 = vmul.f32 %v319_v13, %v319_v13  ;;  %v325_v22 = vmul.f32 %v321_v12, %v321_v12 }
 0x187   : > { %v322_v19 = vsub.f32 %v586_v4, %v318_v16  ;;  %v320_v20 = vsub.f32 %v580_v5, %v316_v17  ;;  %v327_v21 = vsel %vm301_vm0, %v323_v18, 0.0  ;;  %v333_v24 = vsel %vm301_vm0, %v325_v22, 0.0 }
 0x188   : > { %328 = vadd.xlane.f32.xlu0 %v327_v21 }
 0x189   : > { %v324_v23 = vmul.f32 %v320_v20, %v320_v20  ;;  %v326_v26 = vmul.f32 %v322_v19, %v322_v19 }
 0x18b   : > { %v330_v25 = vsel %vm301_vm0, %v324_v23, 0.0  ;;  %v336_v27 = vsel %vm301_vm0, %v326_v26, 0.0 }
 0x18c   : > { %334 = vadd.xlane.f32.xlu0 %v333_v24  ;;  %331 = vadd.xlane.f32.xlu1 %v330_v25 }
 0x190   : > { %337 = vadd.xlane.f32.xlu1 %v336_v27 }
 0x211   : > { %v329_v28 = vpop.xlane.xlu0 %328 }
 0x212   : > { %v339_v29 = vmul.f32 0.0625, %v329_v28 }
 0x214   : > { %v343_v30 = vadd.f32 1e-05, %v339_v29 }
 0x215   : > { %v332_v31 = vpop.xlane.xlu1 %331  ;;  %v335_v32 = vpop.xlane.xlu0 %334 }
 0x216   : > { %627 = vrsqrt.f32 %v343_v30  ;;  %v340_v33 = vmul.f32 0.0625, %v332_v31  ;;  %v341_v34 = vmul.f32 0.0625, %v335_v32 }
 0x218   : > { %v344_v35 = vadd.f32 1e-05, %v340_v33  ;;  %v345_v36 = vadd.f32 1e-05, %v341_v34 }
 0x219   : > { %v338_v37 = vpop.xlane.xlu1 %337 }
 0x21a   : > { %629 = vrsqrt.f32 %v344_v35  ;;  %v342_v38 = vmul.f32 0.0625, %v338_v37 }
 0x21b   : > { %631 = vrsqrt.f32 %v345_v36 }
 0x21c   : > { %v346_v39 = vadd.f32 1e-05, %v342_v38 }
 0x21e   : > { %633 = vrsqrt.f32 %v346_v39 }
 0x223   : > { %v628_v40 = vpop.eup %627 }
 0x224   : > { %v351_v41 = vmul.f32 %v628_v40, %v319_v13 }
 0x226   : > { %vm355_vm1 = vcmp.ge.f32.partialorder %v351_v41, 0.0  ;;  %v359_v42 = vmul.f32 0.2, %v351_v41 }
 0x227   : > { %v630_v43 = vpop.eup %629 }
 0x228   : > { %v632_v44 = vpop.eup %631  ;;  %v363_v45 = vsel %vm355_vm1, %v351_v41, %v359_v42  ;;  %v352_v46 = vmul.f32 %v630_v43, %v320_v20 }
 0x229   : > { %v460_v47 = vpack.c.bf16 %v363_v45, %v363_v45  ;;  %v353_v48 = vmul.f32 %v632_v44, %v321_v12 }
 0x22a   : > { %vm356_vm3 = vcmp.ge.f32.partialorder %v352_v46, 0.0  ;;  %v360_v49 = vmul.f32 0.2, %v352_v46 }
 0x22b   : > { %v634_v50 = vpop.eup %633  ;;  %384 = vst.msk [vmem:[%s143_s6] sm:$0xf] %vm383_vm2, %v460_v47  ;;  %vm357_vm4 = vcmp.ge.f32.partialorder %v353_v48, 0.0  ;;  %v361_v51 = vmul.f32 0.2, %v353_v48 }
 0x22c   : > { %v364_v52 = vsel %vm356_vm3, %v352_v46, %v360_v49  ;;  %v354_v53 = vmul.f32 %v634_v50, %v322_v19 }
 0x22d   : > { %v461_v54 = vpack.c.bf16 %v364_v52, %v364_v52  ;;  %v365_v55 = vsel %vm357_vm4, %v353_v48, %v361_v51 }
 0x22e   : > { %v462_v56 = vpack.c.bf16 %v365_v55, %v365_v55  ;;  %vm358_vm5 = vcmp.ge.f32.partialorder %v354_v53, 0.0  ;;  %v362_v57 = vmul.f32 0.2, %v354_v53 }
 0x22f   : > { %385 = vst.msk [vmem:[%s143_s6 + $0x4] sm:$0xf] %vm383_vm2, %v461_v54 }
 0x230   : > { %386 = vst.msk [vmem:[%s143_s6 + $0x8] sm:$0xf] %vm383_vm2, %v462_v56  ;;  %v366_v58 = vsel %vm358_vm5, %v354_v53, %v362_v57 }
 0x231   : > { %v463_v59 = vpack.c.bf16 %v366_v58, %v366_v58 }
 0x233   : > { %387 = vst.msk [vmem:[%s143_s6 + $0xc] sm:$0xf] %vm383_vm2, %v463_v59 }
 0x234 PF: > { %s12_s9 = sadd.s32 1, %s641_s9  }
 0x235   : > { %p9_p4 = scmp.ge.s32.totalorder %s12_s9, 4  }
 0x237   :  { %11 = sbr.rel (!%p9_p4) target bundleno = 1 (0x1), region = 58 }

// kernel: discriminator_forward.10
= control target key start
LH: loop header
LB: loop body
LE: loop exit
PB: predicated region body
PF: predicated region fallthrough
CT: control target
= control target key end

     0   :  { %s1087_s9 = smov 0   ;;  %s1316_s0 = inlined_call_operand.vmem [shape: f32[64,512], index: 0, kind: input, shape index: {}]   ;;  %s1317_s1 = inlined_call_operand.vmem [shape: bf16[2,512,9], index: 1, kind: input, shape index: {}]   ;;  %s1318_s2 = inlined_call_operand.vmem [shape: bf16[2,64,9], index: 2, kind: output, shape index: {}]  }
   0x1 LB: > { %s740_s10 = sadd.s32 4294967295, %s1070_s9   ;;  %p744_p0 = scmp.ge.s32.totalorder %s1070_s9, 1  ;;  %s1070_s9 = sphi %s1087_s9, %s12_s9  }
   0x2   : > { %p112_p1 = scmp.lt.s32.totalorder %s1070_s9, 3 }
   0x4   : > { %p113_p2 = pnand %p744_p0, %p112_p1 }
   0x5   : > { %p134_p3 = scmp.lt.s32.totalorder (!%p113_p2), %s740_s10, 1 }
   0x6   : > { %116 = sbr.rel (%p113_p2) target bundleno = 588 (0x24c), region = 28 }
   0xb   : > { %v209_v0 = vld [vmem:[%s1316_s0 + $0x8] sm:$0xff]  ;;  %v211_v1 = vld [vmem:[%s1316_s0 + $0x18] sm:$0xff]  ;;  %s1320_s10 = smov (!%p134_p3, %s740_s10), 1  ;;  %vm514_vm0 = vcmask 72704   ;;  %vm676_vm2 = vcmask 68608  }
   0xc   : > { %368 = vmatprep.mubr.f32.mxu0 %v209_v0  ;;  %473 = vmatprep.mubr.f32.mxu1 %v211_v1  ;;  %s759_s15 = sshll.u32 %s1320_s10, 8  ;;  %s760_s27 = sshll.u32 %s1320_s10, 5 }
   0xd   : > { %s1107_s18 = scalar_lea.vmem %s1317_s1, %s759_s15  ;;  %s1288_s30 = scalar_lea.vmem %s1318_s2, %s760_s27 }
   0xe   : > { %v911_v2 = vld [vmem:[%s1107_s18 + $0x78] sm:$0xff]   ;;  %v910_v10 = vld [vmem:[%s1107_s18 + $0x70] sm:$0xff]   ;;  %v909_v22 = vld [vmem:[%s1107_s18 + $0x68] sm:$0xff]  }
   0xf   : > { %v927_v3 = vld [vmem:[%s1107_s18 + $0xf8] sm:$0xff]   ;;  %v831_v5 = vunpack.c.l.bf16 %v911_v2  ;;  %v832_v6 = vunpack.c.h.bf16 %v911_v2  ;;  %v926_v11 = vld [vmem:[%s1107_s18 + $0xf0] sm:$0xff]   ;;  %v828_v18 = vunpack.c.h.bf16 %v910_v10  ;;  %v925_v23 = vld [vmem:[%s1107_s18 + $0xe8] sm:$0xff]   ;;  %v827_v24 = vunpack.c.l.bf16 %v910_v10 }
  0x10   : > { %v903_v4 = vld [vmem:[%s1107_s18 + $0x38] sm:$0xff]   ;;  %v895_v7 = vunpack.c.l.bf16 %v927_v3  ;;  %v896_v8 = vunpack.c.h.bf16 %v927_v3  ;;  %v902_v16 = vld [vmem:[%s1107_s18 + $0x30] sm:$0xff]   ;;  %v892_v19 = vunpack.c.h.bf16 %v926_v11  ;;  %v891_v25 = vunpack.c.l.bf16 %v926_v11  ;;  %v901_v26 = vld [vmem:[%s1107_s18 + $0x28] sm:$0xff]  }
  0x11   : > { %v919_v9 = vld [vmem:[%s1107_s18 + $0xb8] sm:$0xff]   ;;  %v799_v12 = vunpack.c.l.bf16 %v903_v4  ;;  %v800_v13 = vunpack.c.h.bf16 %v903_v4  ;;  %v918_v17 = vld [vmem:[%s1107_s18 + $0xb0] sm:$0xff]   ;;  %928 = vmatprep.subr.mxu0 %v832_v6  ;;  %v796_v20 = vunpack.c.h.bf16 %v902_v16  ;;  %v917_v27 = vld [vmem:[%s1107_s18 + $0xa8] sm:$0xff]   ;;  %v795_v28 = vunpack.c.l.bf16 %v902_v16 }
  0x12   : > { %v863_v14 = vunpack.c.l.bf16 %v919_v9  ;;  %v864_v15 = vunpack.c.h.bf16 %v919_v9  ;;  %984 = vmatprep.subr.mxu1 %v896_v8  ;;  %v860_v21 = vunpack.c.h.bf16 %v918_v17  ;;  %v859_v29 = vunpack.c.l.bf16 %v918_v17  ;;  %v908_v34 = vld [vmem:[%s1107_s18 + $0x60] sm:$0xff]   ;;  %v907_v46 = vld [vmem:[%s1107_s18 + $0x58] sm:$0xff]   ;;  %v906_v58 = vld [vmem:[%s1107_s18 + $0x50] sm:$0xff]  }
  0x13   : > { %929 = vmatpush3.msra.mxu0 %v800_v13  ;;  %v824_v30 = vunpack.c.h.bf16 %v909_v22  ;;  %v888_v31 = vunpack.c.h.bf16 %v925_v23  ;;  %v792_v32 = vunpack.c.h.bf16 %v901_v26  ;;  %v856_v33 = vunpack.c.h.bf16 %v917_v27  ;;  %v924_v35 = vld [vmem:[%s1107_s18 + $0xe0] sm:$0xff]   ;;  %v923_v47 = vld [vmem:[%s1107_s18 + $0xd8] sm:$0xff]   ;;  %v922_v59 = vld [vmem:[%s1107_s18 + $0xd0] sm:$0xff]  }
  0x14   : > { %985 = vmatpush3.msra.mxu1 %v864_v15  ;;  %930 = vmatprep.subr.mxu0 %v831_v5  ;;  %v823_v36 = vunpack.c.l.bf16 %v909_v22  ;;  %v887_v37 = vunpack.c.l.bf16 %v925_v23  ;;  %v900_v38 = vld [vmem:[%s1107_s18 + $0x20] sm:$0xff]   ;;  %v791_v40 = vunpack.c.l.bf16 %v901_v26  ;;  %v855_v41 = vunpack.c.l.bf16 %v917_v27  ;;  %v899_v50 = vld [vmem:[%s1107_s18 + $0x18] sm:$0xff]   ;;  %v898_v62 = vld [vmem:[%s1107_s18 + $0x10] sm:$0xff]  }
  0x15   : > { %986 = vmatprep.subr.mxu1 %v895_v7  ;;  %931 = vmatpush3.msra.mxu0 %v799_v12  ;;  %v916_v39 = vld [vmem:[%s1107_s18 + $0xa0] sm:$0xff]   ;;  %v820_v42 = vunpack.c.h.bf16 %v908_v34  ;;  %v884_v43 = vunpack.c.h.bf16 %v924_v35  ;;  %v788_v44 = vunpack.c.h.bf16 %v900_v38  ;;  %v819_v48 = vunpack.c.l.bf16 %v908_v34  ;;  %v915_v51 = vld [vmem:[%s1107_s18 + $0x98] sm:$0xff]   ;;  %v914_v63 = vld [vmem:[%s1107_s18 + $0x90] sm:$0xff]  }
  0x16   : > { %987 = vmatpush3.msra.mxu1 %v863_v14  ;;  %932 = vmatprep.subr.mxu0 %v828_v18  ;;  %v852_v45 = vunpack.c.h.bf16 %v916_v39  ;;  %v883_v49 = vunpack.c.l.bf16 %v924_v35  ;;  %v787_v52 = vunpack.c.l.bf16 %v900_v38  ;;  %v851_v53 = vunpack.c.l.bf16 %v916_v39  ;;  %v905_v6 = vld [vmem:[%s1107_s18 + $0x48] sm:$0xff]   ;;  %v904_v18 = vld [vmem:[%s1107_s18 + $0x40] sm:$0xff]   ;;  %v210_v35 = vld [vmem:[%s1316_s0 + $0x10] sm:$0xff] }
  0x17   : > { %988 = vmatprep.subr.mxu1 %v892_v19  ;;  %933 = vmatpush3.msra.mxu0 %v796_v20  ;;  %v816_v54 = vunpack.c.h.bf16 %v907_v46  ;;  %v880_v55 = vunpack.c.h.bf16 %v923_v47  ;;  %v784_v56 = vunpack.c.h.bf16 %v899_v50  ;;  %v848_v57 = vunpack.c.h.bf16 %v915_v51  ;;  %v921_v7 = vld [vmem:[%s1107_s18 + $0xc8] sm:$0xff]   ;;  %v920_v19 = vld [vmem:[%s1107_s18 + $0xc0] sm:$0xff]   ;;  %v214_v39 = vld [vmem:[%s1316_s0 + $0x30] sm:$0xff] }
  0x18   : > { %989 = vmatpush3.msra.mxu1 %v860_v21  ;;  %934 = vmatprep.subr.mxu0 %v827_v24  ;;  %v815_v60 = vunpack.c.l.bf16 %v907_v46  ;;  %v879_v61 = vunpack.c.l.bf16 %v923_v47  ;;  %v783_v0 = vunpack.c.l.bf16 %v899_v50  ;;  %v847_v1 = vunpack.c.l.bf16 %v915_v51  ;;  %v897_v10 = vld [vmem:[%s1107_s18 + $0x8] sm:$0xff]   ;;  %v770_v22 = vld [vmem:[%s1107_s18] sm:$0xff]   ;;  %v222_v47 = vld [vmem:[%s1316_s0 + $0x70] sm:$0xff] }
  0x19   : > { %990 = vmatprep.subr.mxu1 %v891_v25  ;;  %935 = vmatpush3.msra.mxu0 %v795_v28  ;;  %v812_v2 = vunpack.c.h.bf16 %v906_v58  ;;  %v876_v3 = vunpack.c.h.bf16 %v922_v59  ;;  %v780_v4 = vunpack.c.h.bf16 %v898_v62  ;;  %v844_v5 = vunpack.c.h.bf16 %v914_v63  ;;  %v913_v11 = vld [vmem:[%s1107_s18 + $0x88] sm:$0xff]   ;;  %v912_v23 = vld [vmem:[%s1107_s18 + $0x80] sm:$0xff]   ;;  %v226_v51 = vld [vmem:[%s1316_s0 + $0x90] sm:$0xff] }
  0x1a   : > { %991 = vmatpush3.msra.mxu1 %v859_v29  ;;  %936 = vmatprep.subr.mxu0 %v824_v30  ;;  %v811_v8 = vunpack.c.l.bf16 %v906_v58  ;;  %v875_v9 = vunpack.c.l.bf16 %v922_v59  ;;  %v779_v12 = vunpack.c.l.bf16 %v898_v62  ;;  %v843_v13 = vunpack.c.l.bf16 %v914_v63  ;;  %v208_v34 = vld [vmem:[%s1316_s0] sm:$0xff]  ;;  %v234_v59 = vld [vmem:[%s1316_s0 + $0xd0] sm:$0xff] }
  0x1b   : > { %992 = vmatprep.subr.mxu1 %v888_v31  ;;  %937 = vmatpush3.msra.mxu0 %v792_v32  ;;  %v808_v14 = vunpack.c.h.bf16 %v905_v6  ;;  %v872_v15 = vunpack.c.h.bf16 %v921_v7  ;;  %v776_v16 = vunpack.c.h.bf16 %v897_v10  ;;  %v840_v17 = vunpack.c.h.bf16 %v913_v11  ;;  %v212_v38 = vld [vmem:[%s1316_s0 + $0x20] sm:$0xff]  ;;  %v238_v63 = vld [vmem:[%s1316_s0 + $0xf0] sm:$0xff] }
  0x1c   : > { %993 = vmatpush3.msra.mxu1 %v856_v33  ;;  %938 = vmatprep.subr.mxu0 %v823_v36  ;;  %v807_v20 = vunpack.c.l.bf16 %v905_v6  ;;  %v871_v21 = vunpack.c.l.bf16 %v921_v7  ;;  %v775_v24 = vunpack.c.l.bf16 %v897_v10  ;;  %v839_v25 = vunpack.c.l.bf16 %v913_v11  ;;  %v213_v36 = vld [vmem:[%s1316_s0 + $0x28] sm:$0xff]  ;;  %v220_v46 = vld [vmem:[%s1316_s0 + $0x60] sm:$0xff] }
  0x1d   : > { %994 = vmatprep.subr.mxu1 %v887_v37  ;;  %939 = vmatpush3.msra.mxu0 %v791_v40  ;;  %v804_v26 = vunpack.c.h.bf16 %v904_v18  ;;  %v868_v27 = vunpack.c.h.bf16 %v920_v19  ;;  %v772_v28 = vunpack.c.h.bf16 %v770_v22  ;;  %v836_v29 = vunpack.c.h.bf16 %v912_v23  ;;  %v215_v37 = vld [vmem:[%s1316_s0 + $0x38] sm:$0xff]  ;;  %v217_v40 = vld [vmem:[%s1316_s0 + $0x48] sm:$0xff]  ;;  %v224_v50 = vld [vmem:[%s1316_s0 + $0x80] sm:$0xff] }
  0x1e   : > { %995 = vmatpush3.msra.mxu1 %v855_v41  ;;  %940 = vmatprep.subr.mxu0 %v820_v42  ;;  %v803_v30 = vunpack.c.l.bf16 %v904_v18  ;;  %v867_v31 = vunpack.c.l.bf16 %v920_v19  ;;  %v771_v32 = vunpack.c.l.bf16 %v770_v22  ;;  %v835_v33 = vunpack.c.l.bf16 %v912_v23  ;;  %v219_v41 = vld [vmem:[%s1316_s0 + $0x58] sm:$0xff]  ;;  %v216_v42 = vld [vmem:[%s1316_s0 + $0x40] sm:$0xff] }
  0x1f   : > { %996 = vmatprep.subr.mxu1 %v884_v43  ;;  %941 = vmatpush3.msra.mxu0 %v788_v44  ;;  %v218_v43 = vld [vmem:[%s1316_s0 + $0x50] sm:$0xff]  ;;  %v221_v44 = vld [vmem:[%s1316_s0 + $0x68] sm:$0xff]  ;;  %v232_v58 = vld [vmem:[%s1316_s0 + $0xc0] sm:$0xff] }
  0x20   : > { %997 = vmatpush3.msra.mxu1 %v852_v45  ;;  %942 = vmatprep.subr.mxu0 %v819_v48  ;;  %v223_v45 = vld [vmem:[%s1316_s0 + $0x78] sm:$0xff]  ;;  %v225_v48 = vld [vmem:[%s1316_s0 + $0x88] sm:$0xff]  ;;  %v236_v62 = vld [vmem:[%s1316_s0 + $0xe0] sm:$0xff] }
  0x21   : > { %998 = vmatprep.subr.mxu1 %v883_v49  ;;  %943 = vmatpush3.msra.mxu0 %v787_v52  ;;  %v227_v49 = vld [vmem:[%s1316_s0 + $0x98] sm:$0xff]  ;;  %v229_v52 = vld [vmem:[%s1316_s0 + $0xa8] sm:$0xff] }
  0x22   : > { %999 = vmatpush3.msra.mxu1 %v851_v53  ;;  %944 = vmatprep.subr.mxu0 %v816_v54  ;;  %v231_v53 = vld [vmem:[%s1316_s0 + $0xb8] sm:$0xff]  ;;  %v228_v54 = vld [vmem:[%s1316_s0 + $0xa0] sm:$0xff] }
  0x23   : > { %1000 = vmatprep.subr.mxu1 %v880_v55  ;;  %945 = vmatpush3.msra.mxu0 %v784_v56  ;;  %v230_v55 = vld [vmem:[%s1316_s0 + $0xb0] sm:$0xff]  ;;  %v233_v56 = vld [vmem:[%s1316_s0 + $0xc8] sm:$0xff] }
  0x24   : > { %1001 = vmatpush3.msra.mxu1 %v848_v57  ;;  %946 = vmatprep.subr.mxu0 %v815_v60  ;;  %v235_v57 = vld [vmem:[%s1316_s0 + $0xd8] sm:$0xff]  ;;  %v237_v60 = vld [vmem:[%s1316_s0 + $0xe8] sm:$0xff] }
  0x25   : > { %1002 = vmatprep.subr.mxu1 %v879_v61  ;;  %947 = vmatpush3.msra.mxu0 %v783_v0  ;;  %v239_v61 = vld [vmem:[%s1316_s0 + $0xf8] sm:$0xff] }
  0x26   : > { %1003 = vmatpush3.msra.mxu1 %v847_v1  ;;  %948 = vmatprep.subr.mxu0 %v812_v2 }
  0x27   : > { %1004 = vmatprep.subr.mxu1 %v876_v3  ;;  %949 = vmatpush3.msra.mxu0 %v780_v4 }
  0x28   : > { %1005 = vmatpush3.msra.mxu1 %v844_v5  ;;  %950 = vmatprep.subr.mxu0 %v811_v8 }
  0x29   : > { %1006 = vmatprep.subr.mxu1 %v875_v9  ;;  %951 = vmatpush3.msra.mxu0 %v779_v12 }
  0x2a   : > { %1007 = vmatpush3.msra.mxu1 %v843_v13  ;;  %952 = vmatprep.subr.mxu0 %v808_v14 }
  0x2b   : > { %1008 = vmatprep.subr.mxu1 %v872_v15  ;;  %953 = vmatpush3.msra.mxu0 %v776_v16 }
  0x2c   : > { %1009 = vmatpush3.msra.mxu1 %v840_v17  ;;  %954 = vmatprep.subr.mxu0 %v807_v20 }
  0x2d   : > { %1010 = vmatprep.subr.mxu1 %v871_v21  ;;  %955 = vmatpush3.msra.mxu0 %v775_v24 }
  0x2e   : > { %1011 = vmatpush3.msra.mxu1 %v839_v25  ;;  %956 = vmatprep.subr.mxu0 %v804_v26 }
  0x2f   : > { %1012 = vmatprep.subr.mxu1 %v868_v27  ;;  %957 = vmatpush3.msra.mxu0 %v772_v28 }
  0x30   : > { %1013 = vmatpush3.msra.mxu1 %v836_v29  ;;  %958 = vmatprep.subr.mxu0 %v803_v30 }
  0x31   : > { %1014 = vmatprep.subr.mxu1 %v867_v31  ;;  %959 = vmatpush3.msra.mxu0 %v771_v32 }
  0x32   : > { %1015 = vmatpush3.msra.mxu1 %v835_v33  ;;  %369 = vmatmul.mubr.f32.vlgmr.msra.gmra.mxu0 %v208_v34 }
  0x33   : > { %474 = vmatmul.mubr.f32.vlgmr.msra.gmra.mxu1 %v210_v35  ;;  %373 = vmatprep.mubr.f32.mxu0 %v213_v36 }
  0x34   : > { %478 = vmatprep.mubr.f32.mxu1 %v215_v37 }
  0x36   : > { %374 = vmatmul.mubr.f32.gmra.mxu0 %v212_v38 }
  0x37   : > { %479 = vmatmul.mubr.f32.gmra.mxu1 %v214_v39  ;;  %378 = vmatprep.mubr.f32.mxu0 %v217_v40 }
  0x38   : > { %483 = vmatprep.mubr.f32.mxu1 %v219_v41 }
  0x3a   : > { %379 = vmatmul.mubr.f32.gmra.mxu0 %v216_v42 }
  0x3b   : > { %484 = vmatmul.mubr.f32.gmra.mxu1 %v218_v43  ;;  %383 = vmatprep.mubr.f32.mxu0 %v221_v44 }
  0x3c   : > { %488 = vmatprep.mubr.f32.mxu1 %v223_v45 }
  0x3e   : > { %384 = vmatmul.mubr.f32.gmra.mxu0 %v220_v46 }
  0x3f   : > { %489 = vmatmul.mubr.f32.gmra.mxu1 %v222_v47  ;;  %388 = vmatprep.mubr.f32.mxu0 %v225_v48 }
  0x40   : > { %493 = vmatprep.mubr.f32.mxu1 %v227_v49 }
  0x42   : > { %389 = vmatmul.mubr.f32.gmra.mxu0 %v224_v50 }
  0x43   : > { %494 = vmatmul.mubr.f32.gmra.mxu1 %v226_v51  ;;  %393 = vmatprep.mubr.f32.mxu0 %v229_v52 }
  0x44   : > { %498 = vmatprep.mubr.f32.mxu1 %v231_v53 }
  0x46   : > { %394 = vmatmul.mubr.f32.gmra.mxu0 %v228_v54 }
  0x47   : > { %499 = vmatmul.mubr.f32.gmra.mxu1 %v230_v55  ;;  %398 = vmatprep.mubr.f32.mxu0 %v233_v56 }
  0x48   : > { %503 = vmatprep.mubr.f32.mxu1 %v235_v57 }
  0x4a   : > { %399 = vmatmul.mubr.f32.gmra.mxu0 %v232_v58 }
  0x4b   : > { %504 = vmatmul.mubr.f32.gmra.mxu1 %v234_v59  ;;  %403 = vmatprep.mubr.f32.mxu0 %v237_v60 }
  0x4c   : > { %508 = vmatprep.mubr.f32.mxu1 %v239_v61 }
  0x4e   : > { %404 = vmatmul.mubr.f32.gmra.mxu0 %v236_v62 }
  0x4f   : > { %509 = vmatmul.mubr.f32.gmra.mxu1 %v238_v63 }
  0xf2   : > { %v960_v0 = vpop.f32.mrf.mxu0 }
  0xf3   : > { %v1016_v1 = vpop.f32.mrf.mxu1 }
  0xf4   : > { %v961_v2 = vpop.f32.mrf.mxu0 }
  0xf5   : > { %v1017_v3 = vpop.f32.mrf.mxu1  ;;  %v962_v4 = vadd.f32 %v961_v2, %v960_v0 }
  0xf6   : > { %v1018_v5 = vadd.f32 %v1017_v3, %v1016_v1  ;;  %v963_v6 = vpop.f32.mrf.mxu0 }
  0xf7   : > { %v1019_v7 = vpop.f32.mrf.mxu1 }
  0xf8   : > { %v1231_v8 = vadd.f32 %v1018_v5, %v962_v4  ;;  %v964_v9 = vpop.f32.mrf.mxu0 }
  0xf9   : > { %v1020_v10 = vpop.f32.mrf.mxu1  ;;  %v965_v11 = vadd.f32 %v964_v9, %v963_v6 }
  0xfa   : > { %v1021_v12 = vadd.f32 %v1020_v10, %v1019_v7  ;;  %v515_v13 = vsel %vm514_vm0, %v1231_v8, 0.0  ;;  %v966_v14 = vpop.f32.mrf.mxu0 }
  0xfb   : > { %v1022_v15 = vpop.f32.mrf.mxu1  ;;  %516 = vadd.xlane.f32.xlu0 %v515_v13 }
  0xfc   : > { %v481_v16 = vadd.f32 %v1021_v12, %v965_v11  ;;  %v967_v17 = vpop.f32.mrf.mxu0 }
  0xfd   : > { %v1023_v18 = vpop.f32.mrf.mxu1  ;;  %v968_v19 = vadd.f32 %v967_v17, %v966_v14 }
  0xfe   : > { %v1024_v20 = vadd.f32 %v1023_v18, %v1022_v15  ;;  %v518_v21 = vsel %vm514_vm0, %v481_v16, 0.0  ;;  %v969_v22 = vpop.f32.mrf.mxu0 }
  0xff   : > { %v1025_v23 = vpop.f32.mrf.mxu1  ;;  %519 = vadd.xlane.f32.xlu0 %v518_v21 }
 0x100   : > { %v486_v24 = vadd.f32 %v1024_v20, %v968_v19  ;;  %v970_v25 = vpop.f32.mrf.mxu0 }
 0x101   : > { %v1026_v26 = vpop.f32.mrf.mxu1  ;;  %v971_v27 = vadd.f32 %v970_v25, %v969_v22 }
 0x102   : > { %v1027_v28 = vadd.f32 %v1026_v26, %v1025_v23  ;;  %v521_v29 = vsel %vm514_vm0, %v486_v24, 0.0  ;;  %v972_v30 = vpop.f32.mrf.mxu0 }
 0x103   : > { %v1028_v31 = vpop.f32.mrf.mxu1  ;;  %522 = vadd.xlane.f32.xlu1 %v521_v29 }
 0x104   : > { %v491_v32 = vadd.f32 %v1027_v28, %v971_v27  ;;  %v973_v33 = vpop.f32.mrf.mxu0 }
 0x105   : > { %v1029_v34 = vpop.f32.mrf.mxu1  ;;  %v974_v35 = vadd.f32 %v973_v33, %v972_v30 }
 0x106   : > { %v1030_v36 = vadd.f32 %v1029_v34, %v1028_v31  ;;  %v524_v37 = vsel %vm514_vm0, %v491_v32, 0.0  ;;  %v975_v38 = vpop.f32.mrf.mxu0 }
 0x107   : > { %v1031_v39 = vpop.f32.mrf.mxu1  ;;  %525 = vadd.xlane.f32.xlu1 %v524_v37 }
 0x108   : > { %v496_v40 = vadd.f32 %v1030_v36, %v974_v35  ;;  %v976_v41 = vpop.f32.mrf.mxu0 }
 0x109   : > { %v1032_v42 = vpop.f32.mrf.mxu1  ;;  %v977_v43 = vadd.f32 %v976_v41, %v975_v38 }
 0x10a   : > { %v1033_v44 = vadd.f32 %v1032_v42, %v1031_v39  ;;  %v527_v45 = vsel %vm514_vm0, %v496_v40, 0.0  ;;  %v978_v46 = vpop.f32.mrf.mxu0 }
 0x10b   : > { %v1034_v47 = vpop.f32.mrf.mxu1  ;;  %528 = vadd.xlane.f32.xlu0 %v527_v45 }
 0x10c   : > { %v501_v48 = vadd.f32 %v1033_v44, %v977_v43  ;;  %v979_v49 = vpop.f32.mrf.mxu0 }
 0x10d   : > { %v1035_v50 = vpop.f32.mrf.mxu1  ;;  %v980_v51 = vadd.f32 %v979_v49, %v978_v46 }
 0x10e   : > { %v1036_v52 = vadd.f32 %v1035_v50, %v1034_v47  ;;  %v530_v53 = vsel %vm514_vm0, %v501_v48, 0.0  ;;  %v981_v54 = vpop.f32.mrf.mxu0 }
 0x10f   : > { %v1037_v55 = vpop.f32.mrf.mxu1  ;;  %531 = vadd.xlane.f32.xlu1 %v530_v53 }
 0x110   : > { %v506_v56 = vadd.f32 %v1036_v52, %v980_v51  ;;  %v982_v57 = vpop.f32.mrf.mxu0 }
 0x111   : > { %v1038_v58 = vpop.f32.mrf.mxu1  ;;  %v983_v59 = vadd.f32 %v982_v57, %v981_v54 }
 0x112   : > { %v1039_v60 = vadd.f32 %v1038_v58, %v1037_v55  ;;  %v533_v61 = vsel %vm514_vm0, %v506_v56, 0.0 }
 0x113   : > { %534 = vadd.xlane.f32.xlu0 %v533_v61 }
 0x114   : > { %v511_v62 = vadd.f32 %v1039_v60, %v983_v59 }
 0x116   : > { %v536_v63 = vsel %vm514_vm0, %v511_v62, 0.0 }
 0x117   : > { %537 = vadd.xlane.f32.xlu1 %v536_v63 }
 0x184   : > { %v517_v0 = vpop.xlane.xlu0 %516 }
 0x185   : > { %v540_v1 = vmul.f32 0.11111111, %v517_v0 }
 0x187   : > { %v1243_v2 = vsub.f32 %v1231_v8, %v540_v1 }
 0x188   : > { %v520_v3 = vpop.xlane.xlu0 %519 }
 0x189   : > { %v541_v4 = vmul.f32 0.11111111, %v520_v3  ;;  %v556_v5 = vmul.f32 %v1243_v2, %v1243_v2 }
 0x18b   : > { %v1247_v6 = vsub.f32 %v481_v16, %v541_v4  ;;  %v564_v7 = vsel %vm514_vm0, %v556_v5, 0.0 }
 0x18c   : > { %v523_v9 = vpop.xlane.xlu1 %522  ;;  %565 = vadd.xlane.f32.xlu0 %v564_v7 }
 0x18d   : > { %v542_v10 = vmul.f32 0.11111111, %v523_v9  ;;  %v557_v11 = vmul.f32 %v1247_v6, %v1247_v6 }
 0x18f   : > { %v1252_v12 = vsub.f32 %v486_v24, %v542_v10  ;;  %v567_v8 = vsel %vm514_vm0, %v557_v11, 0.0 }
 0x190   : > { %v526_v13 = vpop.xlane.xlu1 %525  ;;  %568 = vadd.xlane.f32.xlu1 %v567_v8 }
 0x191   : > { %v543_v14 = vmul.f32 0.11111111, %v526_v13  ;;  %v558_v15 = vmul.f32 %v1252_v12, %v1252_v12 }
 0x193   : > { %v1257_v16 = vsub.f32 %v491_v32, %v543_v14  ;;  %v570_v17 = vsel %vm514_vm0, %v558_v15, 0.0 }
 0x194   : > { %571 = vadd.xlane.f32.xlu0 %v570_v17  ;;  %v529_v18 = vpop.xlane.xlu0 %528 }
 0x195   : > { %v544_v19 = vmul.f32 0.11111111, %v529_v18  ;;  %v559_v20 = vmul.f32 %v1257_v16, %v1257_v16 }
 0x197   : > { %v1262_v21 = vsub.f32 %v496_v40, %v544_v19  ;;  %v573_v22 = vsel %vm514_vm0, %v559_v20, 0.0 }
 0x198   : > { %v532_v23 = vpop.xlane.xlu1 %531  ;;  %574 = vadd.xlane.f32.xlu1 %v573_v22 }
 0x199   : > { %v545_v24 = vmul.f32 0.11111111, %v532_v23  ;;  %v560_v25 = vmul.f32 %v1262_v21, %v1262_v21 }
 0x19b   : > { %v1267_v26 = vsub.f32 %v501_v48, %v545_v24  ;;  %v576_v27 = vsel %vm514_vm0, %v560_v25, 0.0 }
 0x19c   : > { %577 = vadd.xlane.f32.xlu0 %v576_v27  ;;  %v535_v28 = vpop.xlane.xlu0 %534 }
 0x19d   : > { %v546_v29 = vmul.f32 0.11111111, %v535_v28  ;;  %v561_v30 = vmul.f32 %v1267_v26, %v1267_v26 }
 0x19f   : > { %v1272_v31 = vsub.f32 %v506_v56, %v546_v29  ;;  %v579_v32 = vsel %vm514_vm0, %v561_v30, 0.0 }
 0x1a0   : > { %v538_v33 = vpop.xlane.xlu1 %537  ;;  %580 = vadd.xlane.f32.xlu1 %v579_v32 }
 0x1a1   : > { %v547_v34 = vmul.f32 0.11111111, %v538_v33  ;;  %v562_v35 = vmul.f32 %v1272_v31, %v1272_v31 }
 0x1a3   : > { %v1277_v36 = vsub.f32 %v511_v62, %v547_v34  ;;  %v582_v37 = vsel %vm514_vm0, %v562_v35, 0.0 }
 0x1a4   : > { %583 = vadd.xlane.f32.xlu0 %v582_v37 }
 0x1a5   : > { %v563_v38 = vmul.f32 %v1277_v36, %v1277_v36 }
 0x1a7   : > { %v585_v39 = vsel %vm514_vm0, %v563_v38, 0.0 }
 0x1a8   : > { %586 = vadd.xlane.f32.xlu1 %v585_v39 }
 0x215   : > { %v566_v40 = vpop.xlane.xlu0 %565 }
 0x216   : > { %v588_v41 = vmul.f32 0.11111111, %v566_v40 }
 0x218   : > { %v596_v42 = vadd.f32 1e-05, %v588_v41 }
 0x219   : > { %v569_v43 = vpop.xlane.xlu1 %568 }
 0x21a   : > { %1048 = vrsqrt.f32 %v596_v42  ;;  %v589_v44 = vmul.f32 0.11111111, %v569_v43 }
 0x21c   : > { %v597_v45 = vadd.f32 1e-05, %v589_v44 }
 0x21d   : > { %v572_v46 = vpop.xlane.xlu0 %571 }
 0x21e   : > { %1050 = vrsqrt.f32 %v597_v45  ;;  %v590_v47 = vmul.f32 0.11111111, %v572_v46 }
 0x220   : > { %v598_v48 = vadd.f32 1e-05, %v590_v47 }
 0x221   : > { %v575_v49 = vpop.xlane.xlu1 %574 }
 0x222   : > { %1052 = vrsqrt.f32 %v598_v48  ;;  %v591_v50 = vmul.f32 0.11111111, %v575_v49 }
 0x224   : > { %v599_v51 = vadd.f32 1e-05, %v591_v50 }
 0x225   : > { %v578_v52 = vpop.xlane.xlu0 %577 }
 0x226   : > { %1054 = vrsqrt.f32 %v599_v51  ;;  %v592_v53 = vmul.f32 0.11111111, %v578_v52 }
 0x227   : > { %v1049_v54 = vpop.eup %1048 }
 0x228   : > { %v612_v55 = vmul.f32 %v1049_v54, %v1243_v2  ;;  %v600_v56 = vadd.f32 1e-05, %v592_v53 }
 0x229   : > { %v581_v57 = vpop.xlane.xlu1 %580 }
 0x22a   : > { %vm620_vm1 = vcmp.ge.f32.partialorder %v612_v55, 0.0  ;;  %v628_v58 = vmul.f32 0.2, %v612_v55  ;;  %1056 = vrsqrt.f32 %v600_v56  ;;  %v593_v59 = vmul.f32 0.11111111, %v581_v57 }
 0x22b   : > { %v1051_v60 = vpop.eup %1050 }
 0x22c   : > { %v636_v61 = vsel %vm620_vm1, %v612_v55, %v628_v58  ;;  %v613_v62 = vmul.f32 %v1051_v60, %v1247_v6  ;;  %v601_v63 = vadd.f32 1e-05, %v593_v59 }
 0x22d   : > { %v761_v0 = vpack.c.bf16 %v636_v61, %v636_v61  ;;  %v584_v1 = vpop.xlane.xlu0 %583 }
 0x22e   : > { %vm621_vm3 = vcmp.ge.f32.partialorder %v613_v62, 0.0  ;;  %v629_v2 = vmul.f32 0.2, %v613_v62  ;;  %1058 = vrsqrt.f32 %v601_v63  ;;  %v594_v3 = vmul.f32 0.11111111, %v584_v1 }
 0x22f   : > { %v1053_v4 = vpop.eup %1052  ;;  %677 = vst.msk [vmem:[%s1288_s30] sm:$0xf] %vm676_vm2, %v761_v0 }
 0x230   : > { %v637_v5 = vsel %vm621_vm3, %v613_v62, %v629_v2  ;;  %v614_v7 = vmul.f32 %v1053_v4, %v1252_v12  ;;  %v602_v9 = vadd.f32 1e-05, %v594_v3 }
 0x231   : > { %v762_v10 = vpack.c.bf16 %v637_v5, %v637_v5  ;;  %v587_v11 = vpop.xlane.xlu1 %586 }
 0x232   : > { %vm622_vm4 = vcmp.ge.f32.partialorder %v614_v7, 0.0  ;;  %v630_v6 = vmul.f32 0.2, %v614_v7  ;;  %1060 = vrsqrt.f32 %v602_v9  ;;  %v595_v8 = vmul.f32 0.11111111, %v587_v11 }
 0x233   : > { %v1055_v13 = vpop.eup %1054  ;;  %678 = vst.msk [vmem:[%s1288_s30 + $0x4] sm:$0xf] %vm676_vm2, %v762_v10 }
 0x234   : > { %v638_v14 = vsel %vm622_vm4, %v614_v7, %v630_v6  ;;  %v615_v15 = vmul.f32 %v1055_v13, %v1257_v16  ;;  %v603_v17 = vadd.f32 1e-05, %v595_v8 }
 0x235   : > { %v763_v18 = vpack.c.bf16 %v638_v14, %v638_v14 }
 0x236   : > { %vm623_vm5 = vcmp.ge.f32.partialorder %v615_v15, 0.0  ;;  %v631_v19 = vmul.f32 0.2, %v615_v15  ;;  %1062 = vrsqrt.f32 %v603_v17 }
 0x237   : > { %v1057_v12 = vpop.eup %1056  ;;  %679 = vst.msk [vmem:[%s1288_s30 + $0x8] sm:$0xf] %vm676_vm2, %v763_v18 }
 0x238   : > { %v639_v20 = vsel %vm623_vm5, %v615_v15, %v631_v19  ;;  %v616_v22 = vmul.f32 %v1057_v12, %v1262_v21 }
 0x239   : > { %v764_v23 = vpack.c.bf16 %v639_v20, %v639_v20 }
 0x23a   : > { %vm624_vm6 = vcmp.ge.f32.partialorder %v616_v22, 0.0  ;;  %v632_v24 = vmul.f32 0.2, %v616_v22 }
 0x23b   : > { %v1059_v25 = vpop.eup %1058  ;;  %680 = vst.msk [vmem:[%s1288_s30 + $0xc] sm:$0xf] %vm676_vm2, %v764_v23 }
 0x23c   : > { %v640_v16 = vsel %vm624_vm6, %v616_v22, %v632_v24  ;;  %v617_v27 = vmul.f32 %v1059_v25, %v1267_v26 }
 0x23d   : > { %v765_v28 = vpack.c.bf16 %v640_v16, %v640_v16 }
 0x23e   : > { %vm625_vm7 = vcmp.ge.f32.partialorder %v617_v27, 0.0  ;;  %v633_v29 = vmul.f32 0.2, %v617_v27 }
 0x23f   : > { %v1061_v30 = vpop.eup %1060  ;;  %681 = vst.msk [vmem:[%s1288_s30 + $0x10] sm:$0xf] %vm676_vm2, %v765_v28 }
 0x240   : > { %v641_v32 = vsel %vm625_vm7, %v617_v27, %v633_v29  ;;  %v618_v21 = vmul.f32 %v1061_v30, %v1272_v31 }
 0x241   : > { %v766_v33 = vpack.c.bf16 %v641_v32, %v641_v32 }
 0x242   : > { %vm626_vm8 = vcmp.ge.f32.partialorder %v618_v21, 0.0  ;;  %v634_v34 = vmul.f32 0.2, %v618_v21 }
 0x243   : > { %v1063_v35 = vpop.eup %1062  ;;  %682 = vst.msk [vmem:[%s1288_s30 + $0x14] sm:$0xf] %vm676_vm2, %v766_v33 }
 0x244   : > { %v642_v37 = vsel %vm626_vm8, %v618_v21, %v634_v34  ;;  %v619_v26 = vmul.f32 %v1063_v35, %v1277_v36 }
 0x245   : > { %v767_v38 = vpack.c.bf16 %v642_v37, %v642_v37 }
 0x246   : > { %vm627_vm9 = vcmp.ge.f32.partialorder %v619_v26, 0.0  ;;  %v635_v39 = vmul.f32 0.2, %v619_v26 }
 0x247   : > { %683 = vst.msk [vmem:[%s1288_s30 + $0x18] sm:$0xf] %vm676_vm2, %v767_v38 }
 0x248   : > { %v643_v40 = vsel %vm627_vm9, %v619_v26, %v635_v39 }
 0x249   : > { %v768_v41 = vpack.c.bf16 %v643_v40, %v643_v40 }
 0x24b   : > { %684 = vst.msk [vmem:[%s1288_s30 + $0x1c] sm:$0xf] %vm676_vm2, %v768_v41 }
 0x24c PF: > { %s12_s9 = sadd.s32 1, %s1070_s9  }
 0x24d   : > { %p9_p4 = scmp.ge.s32.totalorder %s12_s9, 4  }
 0x24f   :  { %11 = sbr.rel (!%p9_p4) target bundleno = 1 (0x1), region = 58 }

// kernel: discriminator_forward.11
= control target key start
LH: loop header
LB: loop body
LE: loop exit
PB: predicated region body
PF: predicated region fallthrough
CT: control target
= control target key end

     0   :  { %s1323_s14 = smov 0   ;;  %s1449_s0 = inlined_call_operand.vmem [shape: f32[1,1024], index: 0, kind: input, shape index: {}]   ;;  %s1450_s1 = inlined_call_operand.<no memory space> [shape: f32[1,1], index: 1, kind: input, shape index: {}]   ;;  %s1451_s2 = inlined_call_operand.vmem [shape: bf16[2,1024,4], index: 2, kind: input, shape index: {}]   ;;  %s1452_s3 = inlined_call_operand.vmem [shape: f32[2,1,1], index: 3, kind: output, shape index: {}]  }
   0x1   :  { %v8_v0 = vstv %s1450_s1 }
   0x2   :  { %9 = vst [vmem:[#allocation2] sm:$0x1] %v8_v0 }
   0x3 LB: > { %s812_s15 = sadd.s32 4294967295, %s1297_s14   ;;  %p816_p0 = scmp.ge.s32.totalorder %s1297_s14, 1  ;;  %s1297_s14 = sphi %s1323_s14, %s15_s14  }
   0x4   : > { %p139_p1 = scmp.lt.s32.totalorder %s1297_s14, 3 }
   0x6   : > { %p140_p2 = pnand %p816_p0, %p139_p1 }
   0x7   : > { %p161_p3 = scmp.lt.s32.totalorder (!%p140_p2), %s812_s15, 1 }
   0x8   : > { %143 = sbr.rel (%p140_p2) target bundleno = 430 (0x1ae), region = 32 }
   0xd   : > { %v432_v1 = vlaneseq  ;;  %v426_v2 = vld [vmem:[#allocation2] sm:$0x1]  ;;  %v1299_v3 = vmov 0   ;;  %s1454_s15 = smov (!%p161_p3, %s812_s15), 1  ;;  %vm757_vm0 = vcmask 24576   ;;  %vm763_vm1 = vcmask 0  }
   0xe   : > { %1290 = vset.pattern.permute.xlu0 %v1299_v3  ;;  %v1338_v5 = vld [vmem:[%s1449_s0] sm:$0xff]  ;;  %s821_s17 = sshll.u32 %s1454_s15, 9  ;;  %s168_s23 = scalar_lea.vmem %s1452_s3, %s1454_s15 }
   0xf   : > { %v1333_v4 = vshrl.u32 %v432_v1, 7  ;;  %429 = vperm.xlu0 %1290, %v426_v2   ;;  %s1346_s20 = scalar_lea.vmem %s1451_s2, %s821_s17 }
  0x10   : > { %v1092_v8 = vld [vmem:[%s1346_s20 + $0x78] sm:$0xff]   ;;  %v1091_v18 = vld [vmem:[%s1346_s20 + $0x70] sm:$0xff]   ;;  %v1090_v30 = vld [vmem:[%s1346_s20 + $0x68] sm:$0xff]  }
  0x11   : > { %v443_v6 = vsub.s32 1, %v1333_v4  ;;  %v451_v7 = vsub.s32 3, %v1333_v4  ;;  %v1108_v9 = vld [vmem:[%s1346_s20 + $0xf8] sm:$0xff]   ;;  %v884_v13 = vunpack.c.l.bf16 %v1092_v8  ;;  %v885_v14 = vunpack.c.h.bf16 %v1092_v8  ;;  %v1107_v19 = vld [vmem:[%s1346_s20 + $0xf0] sm:$0xff]   ;;  %v1106_v31 = vld [vmem:[%s1346_s20 + $0xe8] sm:$0xff]  }
  0x12   : > { %v1084_v10 = vld [vmem:[%s1346_s20 + $0x38] sm:$0xff]   ;;  %v948_v15 = vunpack.c.l.bf16 %v1108_v9  ;;  %v949_v16 = vunpack.c.h.bf16 %v1108_v9  ;;  %v1083_v24 = vld [vmem:[%s1346_s20 + $0x30] sm:$0xff]   ;;  %v881_v26 = vunpack.c.h.bf16 %v1091_v18  ;;  %v945_v27 = vunpack.c.h.bf16 %v1107_v19  ;;  %v1082_v34 = vld [vmem:[%s1346_s20 + $0x28] sm:$0xff]  }
  0x13   : > { %v444_v11 = vrot.slane %v1338_v5, %v443_v6  ;;  %v452_v12 = vrot.slane %v1338_v5, %v451_v7  ;;  %v1100_v17 = vld [vmem:[%s1346_s20 + $0xb8] sm:$0xff]   ;;  %v852_v20 = vunpack.c.l.bf16 %v1084_v10  ;;  %v853_v21 = vunpack.c.h.bf16 %v1084_v10  ;;  %v1099_v25 = vld [vmem:[%s1346_s20 + $0xb0] sm:$0xff]   ;;  %1141 = vmatprep.subr.mxu0 %v885_v14  ;;  %v1098_v35 = vld [vmem:[%s1346_s20 + $0xa8] sm:$0xff]  }
  0x14   : > { %v916_v22 = vunpack.c.l.bf16 %v1100_v17  ;;  %v917_v23 = vunpack.c.h.bf16 %v1100_v17  ;;  %1176 = vmatprep.subr.mxu1 %v949_v16  ;;  %v849_v28 = vunpack.c.h.bf16 %v1083_v24  ;;  %v913_v29 = vunpack.c.h.bf16 %v1099_v25  ;;  %v1089_v42 = vld [vmem:[%s1346_s20 + $0x60] sm:$0xff]   ;;  %v1088_v54 = vld [vmem:[%s1346_s20 + $0x58] sm:$0xff]   ;;  %v1087_v2 = vld [vmem:[%s1346_s20 + $0x50] sm:$0xff]  }
  0x15   : > { %541 = vmatprep.mubr.f32.mxu0 %v444_v11  ;;  %611 = vmatprep.mubr.f32.mxu1 %v452_v12  ;;  %v880_v32 = vunpack.c.l.bf16 %v1091_v18  ;;  %v944_v33 = vunpack.c.l.bf16 %v1107_v19  ;;  %v848_v36 = vunpack.c.l.bf16 %v1083_v24  ;;  %v912_v37 = vunpack.c.l.bf16 %v1099_v25  ;;  %v1105_v43 = vld [vmem:[%s1346_s20 + $0xe0] sm:$0xff]   ;;  %v1104_v55 = vld [vmem:[%s1346_s20 + $0xd8] sm:$0xff]   ;;  %v1103_v3 = vld [vmem:[%s1346_s20 + $0xd0] sm:$0xff]  }
  0x16   : > { %1142 = vmatpush3.msra.mxu0 %v853_v21  ;;  %1177 = vmatpush3.msra.mxu1 %v917_v23  ;;  %v877_v38 = vunpack.c.h.bf16 %v1090_v30  ;;  %v941_v39 = vunpack.c.h.bf16 %v1106_v31  ;;  %v845_v40 = vunpack.c.h.bf16 %v1082_v34  ;;  %v909_v41 = vunpack.c.h.bf16 %v1098_v35  ;;  %v1081_v46 = vld [vmem:[%s1346_s20 + $0x20] sm:$0xff]   ;;  %v1080_v58 = vld [vmem:[%s1346_s20 + $0x18] sm:$0xff]   ;;  %v1079_v8 = vld [vmem:[%s1346_s20 + $0x10] sm:$0xff]  }
  0x17   : > { %1143 = vmatprep.subr.mxu0 %v884_v13  ;;  %1178 = vmatprep.subr.mxu1 %v948_v15  ;;  %v876_v44 = vunpack.c.l.bf16 %v1090_v30  ;;  %v940_v45 = vunpack.c.l.bf16 %v1106_v31  ;;  %v1097_v47 = vld [vmem:[%s1346_s20 + $0xa0] sm:$0xff]   ;;  %v844_v48 = vunpack.c.l.bf16 %v1082_v34  ;;  %v908_v49 = vunpack.c.l.bf16 %v1098_v35  ;;  %v1096_v59 = vld [vmem:[%s1346_s20 + $0x98] sm:$0xff]   ;;  %v1095_v9 = vld [vmem:[%s1346_s20 + $0x90] sm:$0xff]  }
  0x18   : > { %1144 = vmatpush3.msra.mxu0 %v852_v20  ;;  %1179 = vmatpush3.msra.mxu1 %v916_v22  ;;  %v873_v50 = vunpack.c.h.bf16 %v1089_v42  ;;  %v937_v51 = vunpack.c.h.bf16 %v1105_v43  ;;  %v841_v52 = vunpack.c.h.bf16 %v1081_v46  ;;  %v905_v53 = vunpack.c.h.bf16 %v1097_v47  ;;  %v1086_v16 = vld [vmem:[%s1346_s20 + $0x48] sm:$0xff]  }
  0x19   : > { %1145 = vmatprep.subr.mxu0 %v881_v26  ;;  %1180 = vmatprep.subr.mxu1 %v945_v27  ;;  %v872_v56 = vunpack.c.l.bf16 %v1089_v42  ;;  %v936_v57 = vunpack.c.l.bf16 %v1105_v43  ;;  %v840_v60 = vunpack.c.l.bf16 %v1081_v46  ;;  %v904_v61 = vunpack.c.l.bf16 %v1097_v47  ;;  %v1102_v17 = vld [vmem:[%s1346_s20 + $0xc8] sm:$0xff]   ;;  %v1124_v42 = vld [vmem:[%s1346_s20 + $0x178] sm:$0xff]  }
  0x1a   : > { %1146 = vmatpush3.msra.mxu0 %v849_v28  ;;  %1181 = vmatpush3.msra.mxu1 %v913_v29  ;;  %v869_v62 = vunpack.c.h.bf16 %v1088_v54  ;;  %v933_v63 = vunpack.c.h.bf16 %v1104_v55  ;;  %v837_v0 = vunpack.c.h.bf16 %v1080_v58  ;;  %v901_v1 = vunpack.c.h.bf16 %v1096_v59  ;;  %v1078_v20 = vld [vmem:[%s1346_s20 + $0x8] sm:$0xff]   ;;  %v1085_v28 = vld [vmem:[%s1346_s20 + $0x40] sm:$0xff]   ;;  %v1140_v47 = vld [vmem:[%s1346_s20 + $0x1f8] sm:$0xff]  }
  0x1b   : > { %1147 = vmatprep.subr.mxu0 %v880_v32  ;;  %1182 = vmatprep.subr.mxu1 %v944_v33  ;;  %v868_v6 = vunpack.c.l.bf16 %v1088_v54  ;;  %v932_v7 = vunpack.c.l.bf16 %v1104_v55  ;;  %v836_v10 = vunpack.c.l.bf16 %v1080_v58  ;;  %v900_v11 = vunpack.c.l.bf16 %v1096_v59  ;;  %v1094_v21 = vld [vmem:[%s1346_s20 + $0x88] sm:$0xff]   ;;  %v1101_v29 = vld [vmem:[%s1346_s20 + $0xc0] sm:$0xff]  }
  0x1c   : > { %1148 = vmatpush3.msra.mxu0 %v848_v36  ;;  %1183 = vmatpush3.msra.mxu1 %v912_v37  ;;  %v865_v12 = vunpack.c.h.bf16 %v1087_v2  ;;  %v929_v13 = vunpack.c.h.bf16 %v1103_v3  ;;  %v833_v14 = vunpack.c.h.bf16 %v1079_v8  ;;  %v897_v15 = vunpack.c.h.bf16 %v1095_v9  ;;  %v823_v32 = vld [vmem:[%s1346_s20] sm:$0xff]  }
  0x1d   : > { %1149 = vmatprep.subr.mxu0 %v877_v38  ;;  %1184 = vmatprep.subr.mxu1 %v941_v39  ;;  %v864_v18 = vunpack.c.l.bf16 %v1087_v2  ;;  %v928_v19 = vunpack.c.l.bf16 %v1103_v3  ;;  %v832_v22 = vunpack.c.l.bf16 %v1079_v8  ;;  %v896_v23 = vunpack.c.l.bf16 %v1095_v9  ;;  %v1093_v33 = vld [vmem:[%s1346_s20 + $0x80] sm:$0xff]  }
  0x1e   : > { %1150 = vmatpush3.msra.mxu0 %v845_v40  ;;  %1185 = vmatpush3.msra.mxu1 %v909_v41  ;;  %v861_v24 = vunpack.c.h.bf16 %v1086_v16  ;;  %v925_v25 = vunpack.c.h.bf16 %v1102_v17  ;;  %v829_v26 = vunpack.c.h.bf16 %v1078_v20  ;;  %v893_v27 = vunpack.c.h.bf16 %v1094_v21 }
  0x1f   : > { %1151 = vmatprep.subr.mxu0 %v876_v44  ;;  %1186 = vmatprep.subr.mxu1 %v940_v45  ;;  %v860_v30 = vunpack.c.l.bf16 %v1086_v16  ;;  %v924_v31 = vunpack.c.l.bf16 %v1102_v17  ;;  %v828_v34 = vunpack.c.l.bf16 %v1078_v20  ;;  %v892_v35 = vunpack.c.l.bf16 %v1094_v21  ;;  %v1114_v17 = vld [vmem:[%s1346_s20 + $0x128] sm:$0xff]  }
  0x20   : > { %1152 = vmatpush3.msra.mxu0 %v844_v48  ;;  %1187 = vmatpush3.msra.mxu1 %v908_v49  ;;  %v857_v36 = vunpack.c.h.bf16 %v1085_v28  ;;  %v921_v37 = vunpack.c.h.bf16 %v1101_v29  ;;  %v434_v38 = vsub.s32 0, %v1333_v4  ;;  %v447_v39 = vsub.s32 2, %v1333_v4  ;;  %v1116_v48 = vld [vmem:[%s1346_s20 + $0x138] sm:$0xff]  }
  0x21   : > { %1153 = vmatprep.subr.mxu0 %v873_v50  ;;  %1188 = vmatprep.subr.mxu1 %v937_v51  ;;  %v825_v40 = vunpack.c.h.bf16 %v823_v32  ;;  %v889_v41 = vunpack.c.h.bf16 %v1093_v33  ;;  %v459_v43 = vsub.s32 5, %v1333_v4  ;;  %v467_v44 = vsub.s32 7, %v1333_v4 }
  0x22   : > { %1154 = vmatpush3.msra.mxu0 %v841_v52  ;;  %1189 = vmatpush3.msra.mxu1 %v905_v53  ;;  %v856_v45 = vunpack.c.l.bf16 %v1085_v28  ;;  %v920_v46 = vunpack.c.l.bf16 %v1101_v29  ;;  %v455_v49 = vsub.s32 4, %v1333_v4  ;;  %v463_v50 = vsub.s32 6, %v1333_v4  ;;  %v1132_v53 = vld [vmem:[%s1346_s20 + $0x1b8] sm:$0xff]   ;;  %v1113_v29 = vld [vmem:[%s1346_s20 + $0x120] sm:$0xff]  }
  0x23   : > { %1155 = vmatprep.subr.mxu0 %v872_v56  ;;  %1190 = vmatprep.subr.mxu1 %v936_v57  ;;  %v824_v51 = vunpack.c.l.bf16 %v823_v32  ;;  %v888_v52 = vunpack.c.l.bf16 %v1093_v33  ;;  %v440_v54 = vrot.slane %v1338_v5, %v434_v38  ;;  %v1013_v55 = vunpack.c.h.bf16 %v1124_v42 }
  0x24   : > { %1156 = vmatpush3.msra.mxu0 %v840_v60  ;;  %1191 = vmatpush3.msra.mxu1 %v904_v61  ;;  %v1077_v56 = vunpack.c.h.bf16 %v1140_v47  ;;  %v448_v57 = vrot.slane %v1338_v5, %v447_v39  ;;  %v981_v58 = vunpack.c.h.bf16 %v1116_v48  ;;  %v1397_v59 = vrot.slane %v1338_v5, %v459_v43  ;;  %v1123_v61 = vld [vmem:[%s1346_s20 + $0x170] sm:$0xff]   ;;  %v1136_v39 = vld [vmem:[%s1346_s20 + $0x1d8] sm:$0xff]  }
  0x25   : > { %1157 = vmatprep.subr.mxu0 %v869_v62  ;;  %1192 = vmatprep.subr.mxu1 %v933_v63  ;;  %v1045_v60 = vunpack.c.h.bf16 %v1132_v53  ;;  %v1139_v62 = vld [vmem:[%s1346_s20 + $0x1f0] sm:$0xff]   ;;  %v1402_v63 = vrot.slane %v1338_v5, %v467_v44  ;;  %v1012_v2 = vunpack.c.l.bf16 %v1124_v42  ;;  %v1076_v3 = vunpack.c.l.bf16 %v1140_v47  ;;  %v1112_v42 = vld [vmem:[%s1346_s20 + $0x118] sm:$0xff]  }
  0x26   : > { %1158 = vmatpush3.msra.mxu0 %v837_v0  ;;  %1193 = vmatpush3.msra.mxu1 %v901_v1  ;;  %v1405_v0 = vrot.slane %v1338_v5, %v455_v49  ;;  %v1408_v1 = vrot.slane %v1338_v5, %v463_v50  ;;  %v980_v8 = vunpack.c.l.bf16 %v1116_v48  ;;  %v1044_v9 = vunpack.c.l.bf16 %v1132_v53  ;;  %v1128_v43 = vld [vmem:[%s1346_s20 + $0x198] sm:$0xff]   ;;  %v1119_v50 = vld [vmem:[%s1346_s20 + $0x150] sm:$0xff]  }
  0x27   : > { %1159 = vmatprep.subr.mxu0 %v868_v6  ;;  %1194 = vmatprep.subr.mxu1 %v932_v7  ;;  %v1115_v6 = vld [vmem:[%s1346_s20 + $0x130] sm:$0xff]   ;;  %v1072_v16 = vunpack.c.l.bf16 %v1139_v62  ;;  %v968_v44 = vunpack.c.l.bf16 %v1113_v29  ;;  %v1061_v47 = vunpack.c.h.bf16 %v1136_v39  ;;  %v965_v48 = vunpack.c.h.bf16 %v1112_v42 }
  0x28   : > { %1160 = vmatpush3.msra.mxu0 %v836_v10  ;;  %1195 = vmatpush3.msra.mxu1 %v900_v11  ;;  %v1131_v7 = vld [vmem:[%s1346_s20 + $0x1b0] sm:$0xff]   ;;  %v1009_v10 = vunpack.c.h.bf16 %v1123_v61  ;;  %v1073_v11 = vunpack.c.h.bf16 %v1139_v62  ;;  %v977_v5 = vunpack.c.h.bf16 %v1115_v6  ;;  %v1029_v49 = vunpack.c.h.bf16 %v1128_v43 }
  0x29   : > { %1161 = vmatprep.subr.mxu0 %v865_v12  ;;  %1196 = vmatprep.subr.mxu1 %v929_v13  ;;  %v1041_v12 = vunpack.c.h.bf16 %v1131_v7  ;;  %v1122_v13 = vld [vmem:[%s1346_s20 + $0x168] sm:$0xff]   ;;  %v1040_v20 = vunpack.c.l.bf16 %v1131_v7  ;;  %v1060_v53 = vunpack.c.l.bf16 %v1136_v39 }
  0x2a   : > { %1162 = vmatpush3.msra.mxu0 %v833_v14  ;;  %1197 = vmatpush3.msra.mxu1 %v897_v15  ;;  %v1138_v14 = vld [vmem:[%s1346_s20 + $0x1e8] sm:$0xff]   ;;  %v1008_v15 = vunpack.c.l.bf16 %v1123_v61  ;;  %v1005_v21 = vunpack.c.h.bf16 %v1122_v13 }
  0x2b   : > { %1163 = vmatprep.subr.mxu0 %v864_v18  ;;  %1198 = vmatprep.subr.mxu1 %v928_v19  ;;  %v1130_v18 = vld [vmem:[%s1346_s20 + $0x1a8] sm:$0xff]   ;;  %v976_v19 = vunpack.c.l.bf16 %v1115_v6  ;;  %v1068_v28 = vunpack.c.l.bf16 %v1138_v14  ;;  %v992_v6 = vunpack.c.l.bf16 %v1119_v50 }
  0x2c   : > { %1164 = vmatpush3.msra.mxu0 %v832_v22  ;;  %1199 = vmatpush3.msra.mxu1 %v896_v23  ;;  %v1069_v22 = vunpack.c.h.bf16 %v1138_v14  ;;  %v973_v23 = vunpack.c.h.bf16 %v1114_v17  ;;  %v1036_v32 = vunpack.c.l.bf16 %v1130_v18 }
  0x2d   : > { %1165 = vmatprep.subr.mxu0 %v861_v24  ;;  %1200 = vmatprep.subr.mxu1 %v925_v25  ;;  %v1037_v24 = vunpack.c.h.bf16 %v1130_v18  ;;  %v1121_v25 = vld [vmem:[%s1346_s20 + $0x160] sm:$0xff]  }
  0x2e   : > { %1166 = vmatpush3.msra.mxu0 %v829_v26  ;;  %1201 = vmatpush3.msra.mxu1 %v893_v27  ;;  %v1137_v26 = vld [vmem:[%s1346_s20 + $0x1e0] sm:$0xff]   ;;  %v1004_v27 = vunpack.c.l.bf16 %v1122_v13  ;;  %v1001_v33 = vunpack.c.h.bf16 %v1121_v25 }
  0x2f   : > { %1167 = vmatprep.subr.mxu0 %v860_v30  ;;  %1202 = vmatprep.subr.mxu1 %v924_v31  ;;  %v1129_v30 = vld [vmem:[%s1346_s20 + $0x1a0] sm:$0xff]   ;;  %v972_v31 = vunpack.c.l.bf16 %v1114_v17 }
  0x30   : > { %1168 = vmatpush3.msra.mxu0 %v828_v34  ;;  %1203 = vmatpush3.msra.mxu1 %v892_v35  ;;  %v1065_v34 = vunpack.c.h.bf16 %v1137_v26  ;;  %v969_v35 = vunpack.c.h.bf16 %v1113_v29 }
  0x31   : > { %1169 = vmatprep.subr.mxu0 %v857_v36  ;;  %1204 = vmatprep.subr.mxu1 %v921_v37  ;;  %v1033_v36 = vunpack.c.h.bf16 %v1129_v30  ;;  %v1120_v37 = vld [vmem:[%s1346_s20 + $0x158] sm:$0xff]  }
  0x32   : > { %1170 = vmatpush3.msra.mxu0 %v825_v40  ;;  %1205 = vmatpush3.msra.mxu1 %v889_v41  ;;  %v1000_v40 = vunpack.c.l.bf16 %v1121_v25  ;;  %v1064_v41 = vunpack.c.l.bf16 %v1137_v26 }
  0x33   : > { %1171 = vmatprep.subr.mxu0 %v856_v45  ;;  %1206 = vmatprep.subr.mxu1 %v920_v46  ;;  %v1032_v45 = vunpack.c.l.bf16 %v1129_v30  ;;  %v997_v46 = vunpack.c.h.bf16 %v1120_v37 }
  0x34   : > { %1172 = vmatpush3.msra.mxu0 %v824_v51  ;;  %1207 = vmatpush3.msra.mxu1 %v888_v52  ;;  %v1135_v51 = vld [vmem:[%s1346_s20 + $0x1d0] sm:$0xff]   ;;  %v996_v52 = vunpack.c.l.bf16 %v1120_v37 }
  0x35   : > { %542 = vmatmul.mubr.f32.vlgmr.msra.gmra.mxu0 %v440_v54  ;;  %1211 = vmatprep.subr.mxu0 %v1013_v55  ;;  %v1111_v54 = vld [vmem:[%s1346_s20 + $0x110] sm:$0xff]   ;;  %v1056_v7 = vunpack.c.l.bf16 %v1135_v51 }
  0x36   : > { %1246 = vmatprep.subr.mxu1 %v1077_v56  ;;  %612 = vmatmul.mubr.f32.vlgmr.msra.gmra.mxu1 %v448_v57  ;;  %v1127_v55 = vld [vmem:[%s1346_s20 + $0x190] sm:$0xff]   ;;  %v964_v56 = vunpack.c.l.bf16 %v1112_v42  ;;  %v1028_v57 = vunpack.c.l.bf16 %v1128_v43  ;;  %v961_v61 = vunpack.c.h.bf16 %v1111_v54 }
  0x37   : > { %1212 = vmatpush3.msra.mxu0 %v981_v58  ;;  %1247 = vmatpush3.msra.mxu1 %v1045_v60  ;;  %v993_v58 = vunpack.c.h.bf16 %v1119_v50  ;;  %v1057_v60 = vunpack.c.h.bf16 %v1135_v51  ;;  %v1025_v62 = vunpack.c.h.bf16 %v1127_v55 }
  0x38   : > { %1213 = vmatprep.subr.mxu0 %v1012_v2  ;;  %1248 = vmatprep.subr.mxu1 %v1076_v3  ;;  %v1118_v2 = vld [vmem:[%s1346_s20 + $0x148] sm:$0xff]  }
  0x39   : > { %1214 = vmatpush3.msra.mxu0 %v980_v8  ;;  %1249 = vmatpush3.msra.mxu1 %v1044_v9  ;;  %v1134_v3 = vld [vmem:[%s1346_s20 + $0x1c8] sm:$0xff]   ;;  %v988_v17 = vunpack.c.l.bf16 %v1118_v2 }
  0x3a   : > { %1215 = vmatprep.subr.mxu0 %v1009_v10  ;;  %1250 = vmatprep.subr.mxu1 %v1073_v11  ;;  %v1110_v8 = vld [vmem:[%s1346_s20 + $0x108] sm:$0xff]   ;;  %v960_v10 = vunpack.c.l.bf16 %v1111_v54  ;;  %v1024_v11 = vunpack.c.l.bf16 %v1127_v55  ;;  %v1052_v18 = vunpack.c.l.bf16 %v1134_v3 }
  0x3b   : > { %1216 = vmatpush3.msra.mxu0 %v977_v5  ;;  %1251 = vmatpush3.msra.mxu1 %v1041_v12  ;;  %v1126_v9 = vld [vmem:[%s1346_s20 + $0x188] sm:$0xff]   ;;  %v989_v5 = vunpack.c.h.bf16 %v1118_v2  ;;  %v1053_v12 = vunpack.c.h.bf16 %v1134_v3  ;;  %v957_v13 = vunpack.c.h.bf16 %v1110_v8 }
  0x3c   : > { %1217 = vmatprep.subr.mxu0 %v1008_v15  ;;  %1252 = vmatprep.subr.mxu1 %v1072_v16  ;;  %v1021_v14 = vunpack.c.h.bf16 %v1126_v9  ;;  %v1117_v15 = vld [vmem:[%s1346_s20 + $0x140] sm:$0xff]  }
  0x3d   : > { %1218 = vmatpush3.msra.mxu0 %v976_v19  ;;  %1253 = vmatpush3.msra.mxu1 %v1040_v20  ;;  %v1133_v16 = vld [vmem:[%s1346_s20 + $0x1c0] sm:$0xff]  }
  0x3e   : > { %1219 = vmatprep.subr.mxu0 %v1005_v21  ;;  %1254 = vmatprep.subr.mxu1 %v1069_v22  ;;  %v1109_v19 = vld [vmem:[%s1346_s20 + $0x100] sm:$0xff]   ;;  %v956_v21 = vunpack.c.l.bf16 %v1110_v8  ;;  %v1020_v22 = vunpack.c.l.bf16 %v1126_v9 }
  0x3f   : > { %1220 = vmatpush3.msra.mxu0 %v973_v23  ;;  %1255 = vmatpush3.msra.mxu1 %v1037_v24  ;;  %v1125_v20 = vld [vmem:[%s1346_s20 + $0x180] sm:$0xff]   ;;  %v985_v23 = vunpack.c.h.bf16 %v1117_v15  ;;  %v1049_v24 = vunpack.c.h.bf16 %v1133_v16  ;;  %v953_v25 = vunpack.c.h.bf16 %v1109_v19  ;;  %v952_v29 = vunpack.c.l.bf16 %v1109_v19 }
  0x40   : > { %1221 = vmatprep.subr.mxu0 %v1004_v27  ;;  %1256 = vmatprep.subr.mxu1 %v1068_v28  ;;  %v1017_v26 = vunpack.c.h.bf16 %v1125_v20  ;;  %v984_v27 = vunpack.c.l.bf16 %v1117_v15  ;;  %v1048_v28 = vunpack.c.l.bf16 %v1133_v16  ;;  %v1016_v30 = vunpack.c.l.bf16 %v1125_v20 }
  0x41   : > { %1222 = vmatpush3.msra.mxu0 %v972_v31  ;;  %1257 = vmatpush3.msra.mxu1 %v1036_v32 }
  0x42   : > { %1223 = vmatprep.subr.mxu0 %v1001_v33  ;;  %1258 = vmatprep.subr.mxu1 %v1065_v34 }
  0x43   : > { %1224 = vmatpush3.msra.mxu0 %v969_v35  ;;  %1259 = vmatpush3.msra.mxu1 %v1033_v36 }
  0x44   : > { %1225 = vmatprep.subr.mxu0 %v1000_v40  ;;  %1260 = vmatprep.subr.mxu1 %v1064_v41 }
  0x45   : > { %1226 = vmatpush3.msra.mxu0 %v968_v44  ;;  %1261 = vmatpush3.msra.mxu1 %v1032_v45 }
  0x46   : > { %1227 = vmatprep.subr.mxu0 %v997_v46  ;;  %1262 = vmatprep.subr.mxu1 %v1061_v47 }
  0x47   : > { %1228 = vmatpush3.msra.mxu0 %v965_v48  ;;  %1263 = vmatpush3.msra.mxu1 %v1029_v49 }
  0x48   : > { %1229 = vmatprep.subr.mxu0 %v996_v52  ;;  %1264 = vmatprep.subr.mxu1 %v1060_v53 }
  0x49   : > { %1230 = vmatpush3.msra.mxu0 %v964_v56  ;;  %1265 = vmatpush3.msra.mxu1 %v1028_v57 }
  0x4a   : > { %1231 = vmatprep.subr.mxu0 %v993_v58  ;;  %1266 = vmatprep.subr.mxu1 %v1057_v60 }
  0x4b   : > { %1232 = vmatpush3.msra.mxu0 %v961_v61  ;;  %1267 = vmatpush3.msra.mxu1 %v1025_v62 }
  0x4c   : > { %1233 = vmatprep.subr.mxu0 %v992_v6  ;;  %1268 = vmatprep.subr.mxu1 %v1056_v7 }
  0x4d   : > { %1234 = vmatpush3.msra.mxu0 %v960_v10  ;;  %1269 = vmatpush3.msra.mxu1 %v1024_v11 }
  0x4e   : > { %1235 = vmatprep.subr.mxu0 %v989_v5  ;;  %1270 = vmatprep.subr.mxu1 %v1053_v12 }
  0x4f   : > { %1236 = vmatpush3.msra.mxu0 %v957_v13  ;;  %1271 = vmatpush3.msra.mxu1 %v1021_v14 }
  0x50   : > { %1237 = vmatprep.subr.mxu0 %v988_v17  ;;  %1272 = vmatprep.subr.mxu1 %v1052_v18 }
  0x51   : > { %1238 = vmatpush3.msra.mxu0 %v956_v21  ;;  %1273 = vmatpush3.msra.mxu1 %v1020_v22 }
  0x52   : > { %1239 = vmatprep.subr.mxu0 %v985_v23  ;;  %1274 = vmatprep.subr.mxu1 %v1049_v24 }
  0x53   : > { %1240 = vmatpush3.msra.mxu0 %v953_v25  ;;  %1275 = vmatpush3.msra.mxu1 %v1017_v26 }
  0x54   : > { %1241 = vmatprep.subr.mxu0 %v984_v27  ;;  %1276 = vmatprep.subr.mxu1 %v1048_v28 }
  0x55   : > { %1242 = vmatpush3.msra.mxu0 %v952_v29  ;;  %681 = vmatprep.mubr.f32.mxu0 %v1397_v59 }
  0x56   : > { %1277 = vmatpush3.msra.mxu1 %v1016_v30  ;;  %751 = vmatprep.mubr.f32.mxu1 %v1402_v63 }
  0x57   : > { %682 = vmatmul.mubr.f32.vlgmr.msra.gmra.mxu0 %v1405_v0  ;;  %752 = vmatmul.mubr.f32.vlgmr.msra.gmra.mxu1 %v1408_v1 }
  0x8a   : > { %v430_v32 = vpop.permute.xlu0 %429 }
  0x8b   : > { %v435_v35 = vrot.slane %v430_v32, %v434_v38 }
  0xf5   : > { %v1173_v31 = vpop.f32.mrf.mxu0 }
  0xf6   : > { %v1208_v33 = vpop.f32.mrf.mxu1 }
  0xf7   : > { %v1174_v34 = vpop.f32.mrf.mxu0 }
  0xf8   : > { %v1175_v36 = vadd.f32 %v1174_v34, %v1173_v31  ;;  %v1209_v37 = vpop.f32.mrf.mxu1 }
  0xf9   : > { %v1210_v40 = vadd.f32 %v1209_v37, %v1208_v33 }
  0xfa   : > { %v544_v39 = vadd.f32 %v1175_v36, %v435_v35 }
  0xfc   : > { %v614_v43 = vadd.f32 %v1210_v40, %v544_v39 }
 0x117   : > { %v1243_v59 = vpop.f32.mrf.mxu0  ;;  %v1278_v41 = vpop.f32.mrf.mxu1 }
 0x119   : > { %v1244_v42 = vpop.f32.mrf.mxu0  ;;  %v1279_v63 = vpop.f32.mrf.mxu1 }
 0x11a   : > { %v1245_v0 = vadd.f32 %v1244_v42, %v1243_v59  ;;  %v1280_v1 = vadd.f32 %v1279_v63, %v1278_v41 }
 0x11c   : > { %v684_v44 = vadd.f32 %v1245_v0, %v614_v43 }
 0x11e   : > { %v754_v45 = vadd.f32 %v1280_v1, %v684_v44 }
 0x120   : > { %v758_v46 = vsel %vm757_vm0, %v754_v45, 0.0 }
 0x121   : > { %759 = vadd.xlane.f32.xlu0 %v758_v46 }
 0x1aa   : > { %v760_v4 = vpop.xlane.xlu0 %759 }
 0x1ab   : > { %v762_v38 = vmul.f32 0.25, %v760_v4 }
 0x1ad   : > { %764 = vst.msk [vmem:[%s168_s23] sm:$0x1] %vm763_vm1, %v762_v38 }
 0x1ae PF: > { %s15_s14 = sadd.s32 1, %s1297_s14  }
 0x1af   : > { %p12_p4 = scmp.ge.s32.totalorder %s15_s14, 4  }
 0x1b1   :  { %14 = sbr.rel (!%p12_p4) target bundleno = 3 (0x3), region = 62 }

</bundles_post_ra>
